<compile_context>
chip_gen: v7x
topology: tpu7x:2x2x1
jax: 0.10.0
libtpu: 0.0.40
codegen_flags: <defaults>
</compile_context>

<pallas_src>
import math

import jax
import jax.numpy as jnp
from jax.experimental import pallas as pl
from jax.experimental.pallas import tpu as pltpu


def _make_kernel(TB, K, C, num_heads, head_dim, scale):
    def kernel(x_ref, wqkv_ref, wproj_ref, bias_ref, o_ref, cat_ref):
        cdt = x_ref.dtype  # native compute dtype for MXU operands (bf16 in production)

        # Fused QKV projection for all heads at once: (TB*K, C) @ (C, 3C), f32 accumulation.
        qkv = jnp.dot(x_ref[...], wqkv_ref[...], preferred_element_type=jnp.float32)
        # One reshape per block (not per head): split token rows back into (example, token).
        qkv3 = qkv.astype(cdt).reshape(TB, K, 3 * C)

        # Static (unrolled) per-head loop: all slices below are static lane slices, each head
        # ends with a store into the concat scratch so nothing is carried between iterations.
        for h in range(num_heads):
            q = qkv3[:, :, 0 * C + h * head_dim: 0 * C + (h + 1) * head_dim]
            k = qkv3[:, :, 1 * C + h * head_dim: 1 * C + (h + 1) * head_dim]
            v = qkv3[:, :, 2 * C + h * head_dim: 2 * C + (h + 1) * head_dim]

            # Scores for this head, batched over the TB examples in the block: (TB, K, K) f32.
            s = jnp.einsum('bqd,bkd->bqk', q, k,
                           preferred_element_type=jnp.float32) * scale

            # Numerically-stable softmax with exact normalization, kept in f32.
            s = s - jnp.max(s, axis=-1, keepdims=True)
            p = jnp.exp(s)
            p = p * (1.0 / jnp.sum(p, axis=-1, keepdims=True))

            # attn @ v -> this head's output, written straight into its concat column slice.
            o_h = jnp.einsum('bqk,bkd->bqd', p.astype(cdt), v,
                             preferred_element_type=jnp.float32)
            cat_ref[:, :, h * head_dim:(h + 1) * head_dim] = o_h.astype(cdt)

        # Single fused output projection over the full C contraction, plus bias.
        y = jnp.dot(cat_ref[...].reshape(TB * K, C), wproj_ref[...],
                    preferred_element_type=jnp.float32)
        y = y + bias_ref[...].astype(jnp.float32)          # broadcast (1, C) bias
        o_ref[...] = y.astype(o_ref.dtype)                  # lane-dense 2-D store

    return kernel


def _vmem_config():
    """(per-step working-set budget, scoped vmem limit) keyed by generation.
    v5e/v6e have 128 MiB physical VMEM; v7x only 64 MiB, so stay conservative when unsure."""
    try:
        cap = int(getattr(pltpu.get_tpu_info(), "vmem_capacity_bytes", 64 * 1024 * 1024))
    except Exception:
        cap = 64 * 1024 * 1024
    if cap > 64 * 1024 * 1024:                    # v5e / v6e
        return 32 * 1024 * 1024, 96 * 1024 * 1024
    return 12 * 1024 * 1024, 48 * 1024 * 1024     # v7x or unknown


def _choose_block_examples(BT, K, C, itemsize, budget):
    """Examples per grid block: as big as the VMEM budget allows, but capped at BT//2 so that
    grid[0] >= 2 and both v7x TensorCores get a 'parallel' slice of the work."""

    def working_set(tb):
        rows = tb * K
        io = 2 * 2 * rows * C * itemsize          # double-buffered x and out blocks
        w = 2 * (4 * C * C + C) * itemsize        # resident weights + bias (double-buffered)
        qkv = rows * 3 * C * (4 + itemsize)       # f32 qkv result + narrowed copy
        sc = 2 * tb * K * K * 4                   # per-head scores + probs (f32)
        cat = rows * C * itemsize                 # concat scratch
        y = rows * C * 4                          # f32 projection result
        return io + w + qkv + sc + cat + y

    cap = BT // 2 if BT >= 2 else BT
    best = 1
    for tb in range(1, cap + 1):
        if BT % tb:
            continue
        if working_set(tb) > budget:
            break
        best = tb
    return best


def attention_spatial(x, wqkv, wproj, bproj, num_heads):
    """x: (BT, K, C). wqkv: (3C, C), wproj: (C, C) in torch Linear (out, in) convention;
    bproj: (C,)."""
    BT, K, C = x.shape
    assert C % num_heads == 0, "dim must be divisible by num_heads"
    head_dim = C // num_heads
    scale = head_dim ** (-0.5)
    cdt = x.dtype

    # Free wrapper-side re-layouts (plain XLA ops outside the kernel):
    #  * x as a 2-D (BT*K, C) slab -> lane-dense 2-D blocks, no per-head activation reshape.
    #  * weights transposed once so the kernel does plain row-major matmuls.
    x2 = x.reshape(BT * K, C)
    wqkv_t = jnp.transpose(wqkv).astype(cdt)     # (C, 3C): columns ordered (qkv, head, hd)
    wproj_t = jnp.transpose(wproj).astype(cdt)   # (C, C)
    bias_2d = bproj.reshape(1, C).astype(cdt)

    budget, vmem_limit = _vmem_config()
    TB = _choose_block_examples(BT, K, C, x.dtype.itemsize, budget)
    grid = (BT // TB,)

    kernel = _make_kernel(TB, K, C, num_heads, head_dim, scale)

    out2 = pl.pallas_call(
        kernel,
        out_shape=jax.ShapeDtypeStruct((BT * K, C), x.dtype),
        grid_spec=pltpu.PrefetchScalarGridSpec(
            num_scalar_prefetch=0,
            grid=grid,
            in_specs=[
                pl.BlockSpec((TB * K, C), lambda i: (i, 0)),
                # Weights/bias: full-array blocks with constant index maps -> fetched once,
                # VMEM-resident for the whole grid.
                pl.BlockSpec((C, 3 * C), lambda i: (0, 0)),
                pl.BlockSpec((C, C), lambda i: (0, 0)),
                pl.BlockSpec((1, C), lambda i: (0, 0)),
            ],
            out_specs=pl.BlockSpec((TB * K, C), lambda i: (i, 0)),
            scratch_shapes=[pltpu.VMEM((TB, K, C), cdt)],   # per-block head-concat scratch
        ),
        compiler_params=pltpu.CompilerParams(
            dimension_semantics=("parallel",),   # BT-blocks independent -> megacore on v7x
            vmem_limit_bytes=vmem_limit,
        ),
    )(x2, wqkv_t, wproj_t, bias_2d)

    return out2.reshape(BT, K, C)


def attention_spatial_ref(x, wqkv, wproj, bproj, num_heads):
    """Pure-JAX reference mirroring the PyTorch forward (dropout = identity)."""
    BT, K, C = x.shape
    head_dim = C // num_heads
    scale = head_dim ** (-0.5)
    hp = jax.lax.Precision.HIGHEST
    qkv = jnp.einsum('bkc,oc->bko', x, wqkv, precision=hp)        # (BT, K, 3C)
    qkv = qkv.reshape(BT, K, 3, num_heads, head_dim)
    qkv = jnp.transpose(qkv, (2, 0, 3, 1, 4))                     # (3, BT, H, K, hd)
    q, k, v = qkv[0], qkv[1], qkv[2]
    attn = jnp.einsum('bhqd,bhkd->bhqk', q, k, precision=hp) * scale
    attn = jax.nn.softmax(attn, axis=-1)
    out = jnp.einsum('bhqk,bhkd->bhqd', attn, v, precision=hp)    # (BT, H, K, hd)
    out = jnp.transpose(out, (0, 2, 1, 3)).reshape(BT, K, C)
    return jnp.einsum('bkc,oc->bko', out, wproj, precision=hp) + bproj


if __name__ == "__main__":
    # Small shapes consistent with the module: B=2, T=2 -> BT=4 ; K=16 spatial tokens ;
    # dim C=32 ; num_heads=8 -> head_dim=4.
    B, T, K, C, H = 2, 2, 16, 32, 8
    BT = B * T

    key = jax.random.PRNGKey(0)
    kx, kqkv, kproj, kb = jax.random.split(key, 4)

    x = jax.random.normal(kx, (BT, K, C), dtype=jnp.float32)
    # Deterministic synthetic parameters (torch Linear convention: (out_features, in_features)).
    wqkv = jax.random.normal(kqkv, (3 * C, C), dtype=jnp.float32) * (1.0 / math.sqrt(C))
    wproj = jax.random.normal(kproj, (C, C), dtype=jnp.float32) * (1.0 / math.sqrt(C))
    bproj = jax.random.normal(kb, (C,), dtype=jnp.float32) * 0.01

    out = attention_spatial(x, wqkv, wproj, bproj, H)
    out = jax.block_until_ready(out)

    ref = attention_spatial_ref(x, wqkv, wproj, bproj, H)
    assert out.shape == (BT, K, C)
    # Tolerance sized for the worst case where the in-kernel f32 matmuls go through bf16 MXU
    # passes on hardware while the reference runs at HIGHEST precision; outputs are O(1), so
    # this is still a meaningful functional check (wrong math would be off by O(1)).
    assert jnp.allclose(out, ref, atol=3e-2, rtol=3e-2), (
        "mismatch vs pure-JAX reference: max abs err = "
        f"{float(jnp.max(jnp.abs(out - ref)))}")

    print("KERNEL_OK")
</pallas_src>

<mosaic_0001>
module attributes {stable_mosaic.version = 11 : i64} {
  func.func @kernel(%arg0: i32, %arg1: memref<32x32xf32, #tpu.memory_space<vmem>>, %arg2: memref<32x96xf32, #tpu.memory_space<vmem>>, %arg3: memref<32x32xf32, #tpu.memory_space<vmem>>, %arg4: memref<1x32xf32, #tpu.memory_space<vmem>>, %arg5: memref<32x32xf32, #tpu.memory_space<vmem>>, %arg6: memref<2x16x32xf32, #tpu.memory_space<vmem>>) attributes {dimension_semantics = [#tpu.dimension_semantics<parallel>], iteration_bounds = array<i64: 2>, scalar_prefetch = 0 : i64, scratch_operands = 1 : i64, tpu.core_type = #tpu.core_type<tc>, window_params = [{transform_indices = @transform_0, window_bounds = array<i64: 32, 32>}, {pipeline_mode = #tpu.pipeline_mode<synchronous>, transform_indices = @transform_1, window_bounds = array<i64: 32, 96>}, {pipeline_mode = #tpu.pipeline_mode<synchronous>, transform_indices = @transform_2, window_bounds = array<i64: 32, 32>}, {pipeline_mode = #tpu.pipeline_mode<synchronous>, transform_indices = @transform_3, window_bounds = array<i64: 1, 32>}, {transform_indices = @transform_4, window_bounds = array<i64: 32, 32>}]} {
    %c0 = arith.constant 0 : index
    %c0_0 = arith.constant 0 : index
    %0 = vector.load %arg1[%c0, %c0_0] : memref<32x32xf32, #tpu.memory_space<vmem>>, vector<32x32xf32>
    %c0_1 = arith.constant 0 : index
    %c0_2 = arith.constant 0 : index
    %1 = vector.load %arg2[%c0_1, %c0_2] : memref<32x96xf32, #tpu.memory_space<vmem>>, vector<32x96xf32>
    %cst = arith.constant dense<0.000000e+00> : vector<32x96xf32>
    %2 = tpu.matmul %0, %1, %cst {dimension_numbers = #tpu.dot_dimension_numbers<[1], [0], [0], [1], [0, 0, 1, 1], [], []>} : vector<32x32xf32>, vector<32x96xf32>, vector<32x96xf32> -> vector<32x96xf32>
    %3 = vector.shape_cast %2 : vector<32x96xf32> to vector<2x16x96xf32>
    %4 = vector.extract_strided_slice %3 {offsets = [0, 0, 0], sizes = [2, 16, 4], strides = [1, 1, 1]} : vector<2x16x96xf32> to vector<2x16x4xf32>
    %5 = vector.extract_strided_slice %3 {offsets = [0, 0, 32], sizes = [2, 16, 4], strides = [1, 1, 1]} : vector<2x16x96xf32> to vector<2x16x4xf32>
    %6 = vector.extract_strided_slice %3 {offsets = [0, 0, 64], sizes = [2, 16, 4], strides = [1, 1, 1]} : vector<2x16x96xf32> to vector<2x16x4xf32>
    "tpu.trace_start"() <{level = 10 : i32, message = "bqd,bkd->bqk"}> : () -> ()
    %cst_3 = arith.constant dense<0.000000e+00> : vector<2x16x16xf32>
    %7 = tpu.matmul %4, %5, %cst_3 {dimension_numbers = #tpu.dot_dimension_numbers<[2], [2], [1], [1], [0, 0, 0, 1, 1, 1], [0], [0]>} : vector<2x16x4xf32>, vector<2x16x4xf32>, vector<2x16x16xf32> -> vector<2x16x16xf32>
    "tpu.trace_stop"() : () -> ()
    %cst_4 = arith.constant 5.000000e-01 : f32
    %8 = vector.broadcast %cst_4 : f32 to vector<2x16x16xf32>
    %9 = arith.mulf %7, %8 : vector<2x16x16xf32>
    %cst_5 = arith.constant dense<0xFF800000> : vector<2x16xf32>
    %10 = vector.multi_reduction <maximumf>, %9, %cst_5 [2] : vector<2x16x16xf32> to vector<2x16xf32>
    %11 = vector.shape_cast %10 : vector<2x16xf32> to vector<2x16x1xf32>
    %12 = vector.broadcast %11 : vector<2x16x1xf32> to vector<2x16x16xf32>
    %13 = arith.subf %9, %12 : vector<2x16x16xf32>
    %14 = math.exp %13 : vector<2x16x16xf32>
    %cst_6 = arith.constant dense<0.000000e+00> : vector<2x16xf32>
    %15 = vector.multi_reduction <add>, %14, %cst_6 [2] : vector<2x16x16xf32> to vector<2x16xf32>
    %16 = vector.shape_cast %15 : vector<2x16xf32> to vector<2x16x1xf32>
    %cst_7 = arith.constant 1.000000e+00 : f32
    %17 = vector.broadcast %cst_7 : f32 to vector<2x16x1xf32>
    %18 = arith.divf %17, %16 : vector<2x16x1xf32>
    %19 = vector.broadcast %18 : vector<2x16x1xf32> to vector<2x16x16xf32>
    %20 = arith.mulf %14, %19 : vector<2x16x16xf32>
    "tpu.trace_start"() <{level = 10 : i32, message = "bqk,bkd->bqd"}> : () -> ()
    %cst_8 = arith.constant dense<0.000000e+00> : vector<2x16x4xf32>
    %21 = tpu.matmul %20, %6, %cst_8 {dimension_numbers = #tpu.dot_dimension_numbers<[2], [1], [1], [2], [0, 0, 0, 1, 1, 2], [0], [0]>} : vector<2x16x16xf32>, vector<2x16x4xf32>, vector<2x16x4xf32> -> vector<2x16x4xf32>
    "tpu.trace_stop"() : () -> ()
    %c0_9 = arith.constant 0 : index
    %c0_10 = arith.constant 0 : index
    %c0_11 = arith.constant 0 : index
    %22 = vector.load %arg6[%c0_9, %c0_10, %c0_11] : memref<2x16x32xf32, #tpu.memory_space<vmem>>, vector<2x16x4xf32>
    tpu.vector_store %arg6[%c0_9, %c0_10, %c0_11], %21 {strides = array<i32>} : memref<2x16x32xf32, #tpu.memory_space<vmem>>, vector<2x16x4xf32>,
    %23 = vector.extract_strided_slice %3 {offsets = [0, 0, 4], sizes = [2, 16, 4], strides = [1, 1, 1]} : vector<2x16x96xf32> to vector<2x16x4xf32>
    %24 = vector.extract_strided_slice %3 {offsets = [0, 0, 36], sizes = [2, 16, 4], strides = [1, 1, 1]} : vector<2x16x96xf32> to vector<2x16x4xf32>
    %25 = vector.extract_strided_slice %3 {offsets = [0, 0, 68], sizes = [2, 16, 4], strides = [1, 1, 1]} : vector<2x16x96xf32> to vector<2x16x4xf32>
    "tpu.trace_start"() <{level = 10 : i32, message = "bqd,bkd->bqk"}> : () -> ()
    %cst_12 = arith.constant dense<0.000000e+00> : vector<2x16x16xf32>
    %26 = tpu.matmul %23, %24, %cst_12 {dimension_numbers = #tpu.dot_dimension_numbers<[2], [2], [1], [1], [0, 0, 0, 1, 1, 1], [0], [0]>} : vector<2x16x4xf32>, vector<2x16x4xf32>, vector<2x16x16xf32> -> vector<2x16x16xf32>
    "tpu.trace_stop"() : () -> ()
    %cst_13 = arith.constant 5.000000e-01 : f32
    %27 = vector.broadcast %cst_13 : f32 to vector<2x16x16xf32>
    %28 = arith.mulf %26, %27 : vector<2x16x16xf32>
    %cst_14 = arith.constant dense<0xFF800000> : vector<2x16xf32>
    %29 = vector.multi_reduction <maximumf>, %28, %cst_14 [2] : vector<2x16x16xf32> to vector<2x16xf32>
    %30 = vector.shape_cast %29 : vector<2x16xf32> to vector<2x16x1xf32>
    %31 = vector.broadcast %30 : vector<2x16x1xf32> to vector<2x16x16xf32>
    %32 = arith.subf %28, %31 : vector<2x16x16xf32>
    %33 = math.exp %32 : vector<2x16x16xf32>
    %cst_15 = arith.constant dense<0.000000e+00> : vector<2x16xf32>
    %34 = vector.multi_reduction <add>, %33, %cst_15 [2] : vector<2x16x16xf32> to vector<2x16xf32>
    %35 = vector.shape_cast %34 : vector<2x16xf32> to vector<2x16x1xf32>
    %cst_16 = arith.constant 1.000000e+00 : f32
    %36 = vector.broadcast %cst_16 : f32 to vector<2x16x1xf32>
    %37 = arith.divf %36, %35 : vector<2x16x1xf32>
    %38 = vector.broadcast %37 : vector<2x16x1xf32> to vector<2x16x16xf32>
    %39 = arith.mulf %33, %38 : vector<2x16x16xf32>
    "tpu.trace_start"() <{level = 10 : i32, message = "bqk,bkd->bqd"}> : () -> ()
    %cst_17 = arith.constant dense<0.000000e+00> : vector<2x16x4xf32>
    %40 = tpu.matmul %39, %25, %cst_17 {dimension_numbers = #tpu.dot_dimension_numbers<[2], [1], [1], [2], [0, 0, 0, 1, 1, 2], [0], [0]>} : vector<2x16x16xf32>, vector<2x16x4xf32>, vector<2x16x4xf32> -> vector<2x16x4xf32>
    "tpu.trace_stop"() : () -> ()
    %c0_18 = arith.constant 0 : index
    %c0_19 = arith.constant 0 : index
    %c4 = arith.constant 4 : index
    %41 = vector.load %arg6[%c0_18, %c0_19, %c4] : memref<2x16x32xf32, #tpu.memory_space<vmem>>, vector<2x16x4xf32>
    tpu.vector_store %arg6[%c0_18, %c0_19, %c4], %40 {strides = array<i32>} : memref<2x16x32xf32, #tpu.memory_space<vmem>>, vector<2x16x4xf32>,
    %42 = vector.extract_strided_slice %3 {offsets = [0, 0, 8], sizes = [2, 16, 4], strides = [1, 1, 1]} : vector<2x16x96xf32> to vector<2x16x4xf32>
    %43 = vector.extract_strided_slice %3 {offsets = [0, 0, 40], sizes = [2, 16, 4], strides = [1, 1, 1]} : vector<2x16x96xf32> to vector<2x16x4xf32>
    %44 = vector.extract_strided_slice %3 {offsets = [0, 0, 72], sizes = [2, 16, 4], strides = [1, 1, 1]} : vector<2x16x96xf32> to vector<2x16x4xf32>
    "tpu.trace_start"() <{level = 10 : i32, message = "bqd,bkd->bqk"}> : () -> ()
    %cst_20 = arith.constant dense<0.000000e+00> : vector<2x16x16xf32>
    %45 = tpu.matmul %42, %43, %cst_20 {dimension_numbers = #tpu.dot_dimension_numbers<[2], [2], [1], [1], [0, 0, 0, 1, 1, 1], [0], [0]>} : vector<2x16x4xf32>, vector<2x16x4xf32>, vector<2x16x16xf32> -> vector<2x16x16xf32>
    "tpu.trace_stop"() : () -> ()
    %cst_21 = arith.constant 5.000000e-01 : f32
    %46 = vector.broadcast %cst_21 : f32 to vector<2x16x16xf32>
    %47 = arith.mulf %45, %46 : vector<2x16x16xf32>
    %cst_22 = arith.constant dense<0xFF800000> : vector<2x16xf32>
    %48 = vector.multi_reduction <maximumf>, %47, %cst_22 [2] : vector<2x16x16xf32> to vector<2x16xf32>
    %49 = vector.shape_cast %48 : vector<2x16xf32> to vector<2x16x1xf32>
    %50 = vector.broadcast %49 : vector<2x16x1xf32> to vector<2x16x16xf32>
    %51 = arith.subf %47, %50 : vector<2x16x16xf32>
    %52 = math.exp %51 : vector<2x16x16xf32>
    %cst_23 = arith.constant dense<0.000000e+00> : vector<2x16xf32>
    %53 = vector.multi_reduction <add>, %52, %cst_23 [2] : vector<2x16x16xf32> to vector<2x16xf32>
    %54 = vector.shape_cast %53 : vector<2x16xf32> to vector<2x16x1xf32>
    %cst_24 = arith.constant 1.000000e+00 : f32
    %55 = vector.broadcast %cst_24 : f32 to vector<2x16x1xf32>
    %56 = arith.divf %55, %54 : vector<2x16x1xf32>
    %57 = vector.broadcast %56 : vector<2x16x1xf32> to vector<2x16x16xf32>
    %58 = arith.mulf %52, %57 : vector<2x16x16xf32>
    "tpu.trace_start"() <{level = 10 : i32, message = "bqk,bkd->bqd"}> : () -> ()
    %cst_25 = arith.constant dense<0.000000e+00> : vector<2x16x4xf32>
    %59 = tpu.matmul %58, %44, %cst_25 {dimension_numbers = #tpu.dot_dimension_numbers<[2], [1], [1], [2], [0, 0, 0, 1, 1, 2], [0], [0]>} : vector<2x16x16xf32>, vector<2x16x4xf32>, vector<2x16x4xf32> -> vector<2x16x4xf32>
    "tpu.trace_stop"() : () -> ()
    %c0_26 = arith.constant 0 : index
    %c0_27 = arith.constant 0 : index
    %c8 = arith.constant 8 : index
    %60 = vector.load %arg6[%c0_26, %c0_27, %c8] : memref<2x16x32xf32, #tpu.memory_space<vmem>>, vector<2x16x4xf32>
    tpu.vector_store %arg6[%c0_26, %c0_27, %c8], %59 {strides = array<i32>} : memref<2x16x32xf32, #tpu.memory_space<vmem>>, vector<2x16x4xf32>,
    %61 = vector.extract_strided_slice %3 {offsets = [0, 0, 12], sizes = [2, 16, 4], strides = [1, 1, 1]} : vector<2x16x96xf32> to vector<2x16x4xf32>
    %62 = vector.extract_strided_slice %3 {offsets = [0, 0, 44], sizes = [2, 16, 4], strides = [1, 1, 1]} : vector<2x16x96xf32> to vector<2x16x4xf32>
    %63 = vector.extract_strided_slice %3 {offsets = [0, 0, 76], sizes = [2, 16, 4], strides = [1, 1, 1]} : vector<2x16x96xf32> to vector<2x16x4xf32>
    "tpu.trace_start"() <{level = 10 : i32, message = "bqd,bkd->bqk"}> : () -> ()
    %cst_28 = arith.constant dense<0.000000e+00> : vector<2x16x16xf32>
    %64 = tpu.matmul %61, %62, %cst_28 {dimension_numbers = #tpu.dot_dimension_numbers<[2], [2], [1], [1], [0, 0, 0, 1, 1, 1], [0], [0]>} : vector<2x16x4xf32>, vector<2x16x4xf32>, vector<2x16x16xf32> -> vector<2x16x16xf32>
    "tpu.trace_stop"() : () -> ()
    %cst_29 = arith.constant 5.000000e-01 : f32
    %65 = vector.broadcast %cst_29 : f32 to vector<2x16x16xf32>
    %66 = arith.mulf %64, %65 : vector<2x16x16xf32>
    %cst_30 = arith.constant dense<0xFF800000> : vector<2x16xf32>
    %67 = vector.multi_reduction <maximumf>, %66, %cst_30 [2] : vector<2x16x16xf32> to vector<2x16xf32>
    %68 = vector.shape_cast %67 : vector<2x16xf32> to vector<2x16x1xf32>
    %69 = vector.broadcast %68 : vector<2x16x1xf32> to vector<2x16x16xf32>
    %70 = arith.subf %66, %69 : vector<2x16x16xf32>
    %71 = math.exp %70 : vector<2x16x16xf32>
    %cst_31 = arith.constant dense<0.000000e+00> : vector<2x16xf32>
    %72 = vector.multi_reduction <add>, %71, %cst_31 [2] : vector<2x16x16xf32> to vector<2x16xf32>
    %73 = vector.shape_cast %72 : vector<2x16xf32> to vector<2x16x1xf32>
    %cst_32 = arith.constant 1.000000e+00 : f32
    %74 = vector.broadcast %cst_32 : f32 to vector<2x16x1xf32>
    %75 = arith.divf %74, %73 : vector<2x16x1xf32>
    %76 = vector.broadcast %75 : vector<2x16x1xf32> to vector<2x16x16xf32>
    %77 = arith.mulf %71, %76 : vector<2x16x16xf32>
    "tpu.trace_start"() <{level = 10 : i32, message = "bqk,bkd->bqd"}> : () -> ()
    %cst_33 = arith.constant dense<0.000000e+00> : vector<2x16x4xf32>
    %78 = tpu.matmul %77, %63, %cst_33 {dimension_numbers = #tpu.dot_dimension_numbers<[2], [1], [1], [2], [0, 0, 0, 1, 1, 2], [0], [0]>} : vector<2x16x16xf32>, vector<2x16x4xf32>, vector<2x16x4xf32> -> vector<2x16x4xf32>
    "tpu.trace_stop"() : () -> ()
    %c0_34 = arith.constant 0 : index
    %c0_35 = arith.constant 0 : index
    %c12 = arith.constant 12 : index
    %79 = vector.load %arg6[%c0_34, %c0_35, %c12] : memref<2x16x32xf32, #tpu.memory_space<vmem>>, vector<2x16x4xf32>
    tpu.vector_store %arg6[%c0_34, %c0_35, %c12], %78 {strides = array<i32>} : memref<2x16x32xf32, #tpu.memory_space<vmem>>, vector<2x16x4xf32>,
    %80 = vector.extract_strided_slice %3 {offsets = [0, 0, 16], sizes = [2, 16, 4], strides = [1, 1, 1]} : vector<2x16x96xf32> to vector<2x16x4xf32>
    %81 = vector.extract_strided_slice %3 {offsets = [0, 0, 48], sizes = [2, 16, 4], strides = [1, 1, 1]} : vector<2x16x96xf32> to vector<2x16x4xf32>
    %82 = vector.extract_strided_slice %3 {offsets = [0, 0, 80], sizes = [2, 16, 4], strides = [1, 1, 1]} : vector<2x16x96xf32> to vector<2x16x4xf32>
    "tpu.trace_start"() <{level = 10 : i32, message = "bqd,bkd->bqk"}> : () -> ()
    %cst_36 = arith.constant dense<0.000000e+00> : vector<2x16x16xf32>
    %83 = tpu.matmul %80, %81, %cst_36 {dimension_numbers = #tpu.dot_dimension_numbers<[2], [2], [1], [1], [0, 0, 0, 1, 1, 1], [0], [0]>} : vector<2x16x4xf32>, vector<2x16x4xf32>, vector<2x16x16xf32> -> vector<2x16x16xf32>
    "tpu.trace_stop"() : () -> ()
    %cst_37 = arith.constant 5.000000e-01 : f32
    %84 = vector.broadcast %cst_37 : f32 to vector<2x16x16xf32>
    %85 = arith.mulf %83, %84 : vector<2x16x16xf32>
    %cst_38 = arith.constant dense<0xFF800000> : vector<2x16xf32>
    %86 = vector.multi_reduction <maximumf>, %85, %cst_38 [2] : vector<2x16x16xf32> to vector<2x16xf32>
    %87 = vector.shape_cast %86 : vector<2x16xf32> to vector<2x16x1xf32>
    %88 = vector.broadcast %87 : vector<2x16x1xf32> to vector<2x16x16xf32>
    %89 = arith.subf %85, %88 : vector<2x16x16xf32>
    %90 = math.exp %89 : vector<2x16x16xf32>
    %cst_39 = arith.constant dense<0.000000e+00> : vector<2x16xf32>
    %91 = vector.multi_reduction <add>, %90, %cst_39 [2] : vector<2x16x16xf32> to vector<2x16xf32>
    %92 = vector.shape_cast %91 : vector<2x16xf32> to vector<2x16x1xf32>
    %cst_40 = arith.constant 1.000000e+00 : f32
    %93 = vector.broadcast %cst_40 : f32 to vector<2x16x1xf32>
    %94 = arith.divf %93, %92 : vector<2x16x1xf32>
    %95 = vector.broadcast %94 : vector<2x16x1xf32> to vector<2x16x16xf32>
    %96 = arith.mulf %90, %95 : vector<2x16x16xf32>
    "tpu.trace_start"() <{level = 10 : i32, message = "bqk,bkd->bqd"}> : () -> ()
    %cst_41 = arith.constant dense<0.000000e+00> : vector<2x16x4xf32>
    %97 = tpu.matmul %96, %82, %cst_41 {dimension_numbers = #tpu.dot_dimension_numbers<[2], [1], [1], [2], [0, 0, 0, 1, 1, 2], [0], [0]>} : vector<2x16x16xf32>, vector<2x16x4xf32>, vector<2x16x4xf32> -> vector<2x16x4xf32>
    "tpu.trace_stop"() : () -> ()
    %c0_42 = arith.constant 0 : index
    %c0_43 = arith.constant 0 : index
    %c16 = arith.constant 16 : index
    %98 = vector.load %arg6[%c0_42, %c0_43, %c16] : memref<2x16x32xf32, #tpu.memory_space<vmem>>, vector<2x16x4xf32>
    tpu.vector_store %arg6[%c0_42, %c0_43, %c16], %97 {strides = array<i32>} : memref<2x16x32xf32, #tpu.memory_space<vmem>>, vector<2x16x4xf32>,
    %99 = vector.extract_strided_slice %3 {offsets = [0, 0, 20], sizes = [2, 16, 4], strides = [1, 1, 1]} : vector<2x16x96xf32> to vector<2x16x4xf32>
    %100 = vector.extract_strided_slice %3 {offsets = [0, 0, 52], sizes = [2, 16, 4], strides = [1, 1, 1]} : vector<2x16x96xf32> to vector<2x16x4xf32>
    %101 = vector.extract_strided_slice %3 {offsets = [0, 0, 84], sizes = [2, 16, 4], strides = [1, 1, 1]} : vector<2x16x96xf32> to vector<2x16x4xf32>
    "tpu.trace_start"() <{level = 10 : i32, message = "bqd,bkd->bqk"}> : () -> ()
    %cst_44 = arith.constant dense<0.000000e+00> : vector<2x16x16xf32>
    %102 = tpu.matmul %99, %100, %cst_44 {dimension_numbers = #tpu.dot_dimension_numbers<[2], [2], [1], [1], [0, 0, 0, 1, 1, 1], [0], [0]>} : vector<2x16x4xf32>, vector<2x16x4xf32>, vector<2x16x16xf32> -> vector<2x16x16xf32>
    "tpu.trace_stop"() : () -> ()
    %cst_45 = arith.constant 5.000000e-01 : f32
    %103 = vector.broadcast %cst_45 : f32 to vector<2x16x16xf32>
    %104 = arith.mulf %102, %103 : vector<2x16x16xf32>
    %cst_46 = arith.constant dense<0xFF800000> : vector<2x16xf32>
    %105 = vector.multi_reduction <maximumf>, %104, %cst_46 [2] : vector<2x16x16xf32> to vector<2x16xf32>
    %106 = vector.shape_cast %105 : vector<2x16xf32> to vector<2x16x1xf32>
    %107 = vector.broadcast %106 : vector<2x16x1xf32> to vector<2x16x16xf32>
    %108 = arith.subf %104, %107 : vector<2x16x16xf32>
    %109 = math.exp %108 : vector<2x16x16xf32>
    %cst_47 = arith.constant dense<0.000000e+00> : vector<2x16xf32>
    %110 = vector.multi_reduction <add>, %109, %cst_47 [2] : vector<2x16x16xf32> to vector<2x16xf32>
    %111 = vector.shape_cast %110 : vector<2x16xf32> to vector<2x16x1xf32>
    %cst_48 = arith.constant 1.000000e+00 : f32
    %112 = vector.broadcast %cst_48 : f32 to vector<2x16x1xf32>
    %113 = arith.divf %112, %111 : vector<2x16x1xf32>
    %114 = vector.broadcast %113 : vector<2x16x1xf32> to vector<2x16x16xf32>
    %115 = arith.mulf %109, %114 : vector<2x16x16xf32>
    "tpu.trace_start"() <{level = 10 : i32, message = "bqk,bkd->bqd"}> : () -> ()
    %cst_49 = arith.constant dense<0.000000e+00> : vector<2x16x4xf32>
    %116 = tpu.matmul %115, %101, %cst_49 {dimension_numbers = #tpu.dot_dimension_numbers<[2], [1], [1], [2], [0, 0, 0, 1, 1, 2], [0], [0]>} : vector<2x16x16xf32>, vector<2x16x4xf32>, vector<2x16x4xf32> -> vector<2x16x4xf32>
    "tpu.trace_stop"() : () -> ()
    %c0_50 = arith.constant 0 : index
    %c0_51 = arith.constant 0 : index
    %c20 = arith.constant 20 : index
    %117 = vector.load %arg6[%c0_50, %c0_51, %c20] : memref<2x16x32xf32, #tpu.memory_space<vmem>>, vector<2x16x4xf32>
    tpu.vector_store %arg6[%c0_50, %c0_51, %c20], %116 {strides = array<i32>} : memref<2x16x32xf32, #tpu.memory_space<vmem>>, vector<2x16x4xf32>,
    %118 = vector.extract_strided_slice %3 {offsets = [0, 0, 24], sizes = [2, 16, 4], strides = [1, 1, 1]} : vector<2x16x96xf32> to vector<2x16x4xf32>
    %119 = vector.extract_strided_slice %3 {offsets = [0, 0, 56], sizes = [2, 16, 4], strides = [1, 1, 1]} : vector<2x16x96xf32> to vector<2x16x4xf32>
    %120 = vector.extract_strided_slice %3 {offsets = [0, 0, 88], sizes = [2, 16, 4], strides = [1, 1, 1]} : vector<2x16x96xf32> to vector<2x16x4xf32>
    "tpu.trace_start"() <{level = 10 : i32, message = "bqd,bkd->bqk"}> : () -> ()
    %cst_52 = arith.constant dense<0.000000e+00> : vector<2x16x16xf32>
    %121 = tpu.matmul %118, %119, %cst_52 {dimension_numbers = #tpu.dot_dimension_numbers<[2], [2], [1], [1], [0, 0, 0, 1, 1, 1], [0], [0]>} : vector<2x16x4xf32>, vector<2x16x4xf32>, vector<2x16x16xf32> -> vector<2x16x16xf32>
    "tpu.trace_stop"() : () -> ()
    %cst_53 = arith.constant 5.000000e-01 : f32
    %122 = vector.broadcast %cst_53 : f32 to vector<2x16x16xf32>
    %123 = arith.mulf %121, %122 : vector<2x16x16xf32>
    %cst_54 = arith.constant dense<0xFF800000> : vector<2x16xf32>
    %124 = vector.multi_reduction <maximumf>, %123, %cst_54 [2] : vector<2x16x16xf32> to vector<2x16xf32>
    %125 = vector.shape_cast %124 : vector<2x16xf32> to vector<2x16x1xf32>
    %126 = vector.broadcast %125 : vector<2x16x1xf32> to vector<2x16x16xf32>
    %127 = arith.subf %123, %126 : vector<2x16x16xf32>
    %128 = math.exp %127 : vector<2x16x16xf32>
    %cst_55 = arith.constant dense<0.000000e+00> : vector<2x16xf32>
    %129 = vector.multi_reduction <add>, %128, %cst_55 [2] : vector<2x16x16xf32> to vector<2x16xf32>
    %130 = vector.shape_cast %129 : vector<2x16xf32> to vector<2x16x1xf32>
    %cst_56 = arith.constant 1.000000e+00 : f32
    %131 = vector.broadcast %cst_56 : f32 to vector<2x16x1xf32>
    %132 = arith.divf %131, %130 : vector<2x16x1xf32>
    %133 = vector.broadcast %132 : vector<2x16x1xf32> to vector<2x16x16xf32>
    %134 = arith.mulf %128, %133 : vector<2x16x16xf32>
    "tpu.trace_start"() <{level = 10 : i32, message = "bqk,bkd->bqd"}> : () -> ()
    %cst_57 = arith.constant dense<0.000000e+00> : vector<2x16x4xf32>
    %135 = tpu.matmul %134, %120, %cst_57 {dimension_numbers = #tpu.dot_dimension_numbers<[2], [1], [1], [2], [0, 0, 0, 1, 1, 2], [0], [0]>} : vector<2x16x16xf32>, vector<2x16x4xf32>, vector<2x16x4xf32> -> vector<2x16x4xf32>
    "tpu.trace_stop"() : () -> ()
    %c0_58 = arith.constant 0 : index
    %c0_59 = arith.constant 0 : index
    %c24 = arith.constant 24 : index
    %136 = vector.load %arg6[%c0_58, %c0_59, %c24] : memref<2x16x32xf32, #tpu.memory_space<vmem>>, vector<2x16x4xf32>
    tpu.vector_store %arg6[%c0_58, %c0_59, %c24], %135 {strides = array<i32>} : memref<2x16x32xf32, #tpu.memory_space<vmem>>, vector<2x16x4xf32>,
    %137 = vector.extract_strided_slice %3 {offsets = [0, 0, 28], sizes = [2, 16, 4], strides = [1, 1, 1]} : vector<2x16x96xf32> to vector<2x16x4xf32>
    %138 = vector.extract_strided_slice %3 {offsets = [0, 0, 60], sizes = [2, 16, 4], strides = [1, 1, 1]} : vector<2x16x96xf32> to vector<2x16x4xf32>
    %139 = vector.extract_strided_slice %3 {offsets = [0, 0, 92], sizes = [2, 16, 4], strides = [1, 1, 1]} : vector<2x16x96xf32> to vector<2x16x4xf32>
    "tpu.trace_start"() <{level = 10 : i32, message = "bqd,bkd->bqk"}> : () -> ()
    %cst_60 = arith.constant dense<0.000000e+00> : vector<2x16x16xf32>
    %140 = tpu.matmul %137, %138, %cst_60 {dimension_numbers = #tpu.dot_dimension_numbers<[2], [2], [1], [1], [0, 0, 0, 1, 1, 1], [0], [0]>} : vector<2x16x4xf32>, vector<2x16x4xf32>, vector<2x16x16xf32> -> vector<2x16x16xf32>
    "tpu.trace_stop"() : () -> ()
    %cst_61 = arith.constant 5.000000e-01 : f32
    %141 = vector.broadcast %cst_61 : f32 to vector<2x16x16xf32>
    %142 = arith.mulf %140, %141 : vector<2x16x16xf32>
    %cst_62 = arith.constant dense<0xFF800000> : vector<2x16xf32>
    %143 = vector.multi_reduction <maximumf>, %142, %cst_62 [2] : vector<2x16x16xf32> to vector<2x16xf32>
    %144 = vector.shape_cast %143 : vector<2x16xf32> to vector<2x16x1xf32>
    %145 = vector.broadcast %144 : vector<2x16x1xf32> to vector<2x16x16xf32>
    %146 = arith.subf %142, %145 : vector<2x16x16xf32>
    %147 = math.exp %146 : vector<2x16x16xf32>
    %cst_63 = arith.constant dense<0.000000e+00> : vector<2x16xf32>
    %148 = vector.multi_reduction <add>, %147, %cst_63 [2] : vector<2x16x16xf32> to vector<2x16xf32>
    %149 = vector.shape_cast %148 : vector<2x16xf32> to vector<2x16x1xf32>
    %cst_64 = arith.constant 1.000000e+00 : f32
    %150 = vector.broadcast %cst_64 : f32 to vector<2x16x1xf32>
    %151 = arith.divf %150, %149 : vector<2x16x1xf32>
    %152 = vector.broadcast %151 : vector<2x16x1xf32> to vector<2x16x16xf32>
    %153 = arith.mulf %147, %152 : vector<2x16x16xf32>
    "tpu.trace_start"() <{level = 10 : i32, message = "bqk,bkd->bqd"}> : () -> ()
    %cst_65 = arith.constant dense<0.000000e+00> : vector<2x16x4xf32>
    %154 = tpu.matmul %153, %139, %cst_65 {dimension_numbers = #tpu.dot_dimension_numbers<[2], [1], [1], [2], [0, 0, 0, 1, 1, 2], [0], [0]>} : vector<2x16x16xf32>, vector<2x16x4xf32>, vector<2x16x4xf32> -> vector<2x16x4xf32>
    "tpu.trace_stop"() : () -> ()
    %c0_66 = arith.constant 0 : index
    %c0_67 = arith.constant 0 : index
    %c28 = arith.constant 28 : index
    %155 = vector.load %arg6[%c0_66, %c0_67, %c28] : memref<2x16x32xf32, #tpu.memory_space<vmem>>, vector<2x16x4xf32>
    tpu.vector_store %arg6[%c0_66, %c0_67, %c28], %154 {strides = array<i32>} : memref<2x16x32xf32, #tpu.memory_space<vmem>>, vector<2x16x4xf32>,
    %c0_68 = arith.constant 0 : index
    %c0_69 = arith.constant 0 : index
    %c0_70 = arith.constant 0 : index
    %156 = vector.load %arg6[%c0_68, %c0_69, %c0_70] : memref<2x16x32xf32, #tpu.memory_space<vmem>>, vector<2x16x32xf32>
    %157 = vector.shape_cast %156 : vector<2x16x32xf32> to vector<32x32xf32>
    %c0_71 = arith.constant 0 : index
    %c0_72 = arith.constant 0 : index
    %158 = vector.load %arg3[%c0_71, %c0_72] : memref<32x32xf32, #tpu.memory_space<vmem>>, vector<32x32xf32>
    %cst_73 = arith.constant dense<0.000000e+00> : vector<32x32xf32>
    %159 = tpu.matmul %157, %158, %cst_73 {dimension_numbers = #tpu.dot_dimension_numbers<[1], [0], [0], [1], [0, 0, 1, 1], [], []>} : vector<32x32xf32>, vector<32x32xf32>, vector<32x32xf32> -> vector<32x32xf32>
    %c0_74 = arith.constant 0 : index
    %c0_75 = arith.constant 0 : index
    %160 = vector.load %arg4[%c0_74, %c0_75] : memref<1x32xf32, #tpu.memory_space<vmem>>, vector<1x32xf32>
    %161 = vector.broadcast %160 : vector<1x32xf32> to vector<32x32xf32>
    %162 = arith.addf %159, %161 : vector<32x32xf32>
    %c0_76 = arith.constant 0 : index
    %c0_77 = arith.constant 0 : index
    %163 = vector.load %arg5[%c0_76, %c0_77] : memref<32x32xf32, #tpu.memory_space<vmem>>, vector<32x32xf32>
    tpu.vector_store %arg5[%c0_76, %c0_77], %162 {strides = array<i32>} : memref<32x32xf32, #tpu.memory_space<vmem>>, vector<32x32xf32>,
    return
  }
  func.func @transform_0(%arg0: i32) -> (i32, i32) {
    %c0_i32 = arith.constant 0 : i32
    %c0_i32_0 = arith.constant 0 : i32
    return %arg0, %c0_i32 : i32, i32
  }
  func.func @transform_1(%arg0: i32) -> (i32, i32) {
    %c0_i32 = arith.constant 0 : i32
    %c0_i32_0 = arith.constant 0 : i32
    %c0_i32_1 = arith.constant 0 : i32
    return %c0_i32, %c0_i32_0 : i32, i32
  }
  func.func @transform_2(%arg0: i32) -> (i32, i32) {
    %c0_i32 = arith.constant 0 : i32
    %c0_i32_0 = arith.constant 0 : i32
    %c0_i32_1 = arith.constant 0 : i32
    return %c0_i32, %c0_i32_0 : i32, i32
  }
  func.func @transform_3(%arg0: i32) -> (i32, i32) {
    %c0_i32 = arith.constant 0 : i32
    %c0_i32_0 = arith.constant 0 : i32
    %c0_i32_1 = arith.constant 0 : i32
    return %c0_i32, %c0_i32_0 : i32, i32
  }
  func.func @transform_4(%arg0: i32) -> (i32, i32) {
    %c0_i32 = arith.constant 0 : i32
    %c0_i32_0 = arith.constant 0 : i32
    return %arg0, %c0_i32 : i32, i32
  }
}

</mosaic_0001>

<bundles_post_ra>
// kernel: tpu_custom_call.1
= control target key start
LH: loop header
LB: loop body
LE: loop exit
PB: predicated region body
PF: predicated region fallthrough
CT: control target
= control target key end

     0   :  { %s4969_s15 = smov 0   ;;  %s5446_s0 = inlined_call_operand.vmem [shape: f32[64,32], index: 0, kind: input, shape index: {}]   ;;  %s5447_s1 = inlined_call_operand.vmem [shape: f32[32,96], index: 1, kind: input, shape index: {}]   ;;  %s5448_s2 = inlined_call_operand.vmem [shape: f32[32,32], index: 2, kind: input, shape index: {}]   ;;  %s5449_s3 = inlined_call_operand.vmem [shape: f32[1,32], index: 3, kind: input, shape index: {}]   ;;  %s5450_s4 = inlined_call_operand.vmem [shape: f32[64,32], index: 4, kind: output, shape index: {}]  }
   0x1 LB: > { %s3892_s16 = sadd.s32 4294967295, %s4912_s15   ;;  %p3896_p0 = scmp.ge.s32.totalorder %s4912_s15, 1  ;;  %s4912_s15 = sphi %s4969_s15, %s14_s15  }
   0x2   : > { %p163_p1 = scmp.lt.s32.totalorder %s4912_s15, 3 }
   0x4   : > { %p164_p2 = pnand %p3896_p0, %p163_p1 }
   0x5   : > { %v205_v0 = vld [vmem:[%s5447_s1] sm:$0xff] (!%p164_p2)  ;;  %v206_v1 = vld [vmem:[%s5447_s1 + $0x8] sm:$0xff] (!%p164_p2)  ;;  %v207_v2 = vld [vmem:[%s5447_s1 + $0x10] sm:$0xff] (!%p164_p2)  ;;  %s3897_s23 = sshll.u32 (!%p164_p2), %s3892_s16, 2  ;;  %vm209_vm0 = vcmask (!%p164_p2), 261120   ;;  %vm313_vm1 = vcmask (!%p164_p2), 31744  }
   0x6   : > { %167 = sbr.rel (%p164_p2) target bundleno = 5435 (0x153b), region = 36  ;;  %v4404_v3 = vpack.c.bf16 (!%p164_p2), %v206_v1, %v205_v0  ;;  %v208_v4 = vld [vmem:[%s5447_s1 + $0x18] sm:$0xff] (!%p164_p2)  ;;  %p190_p3 = scmp.lt.s32.totalorder (!%p164_p2), %s3897_s23, 7  ;;  %vm5025_vm2 = vmpackc.low (!%p164_p2), %vm313_vm1, %vm313_vm1  ;;  %vm490_vm3 = vcmask (!%p164_p2), 130048   ;;  %vm1141_vm4 = vcmask (!%p164_p2), 64544   ;;  %vm1570_vm5 = vcmask (!%p164_p2), 97344  }
   0x7   : > { %v4408_v5 = vpack.c.bf16 (!%p164_p2), %v208_v4, %v207_v2  ;;  %s4914_s30 = smov (!%p164_p2), 96   ;;  %s4915_s5 = smov (!%p164_p2), 64   ;;  %vm1999_vm6 = vcmask (!%p164_p2), 130144   ;;  %vm2428_vm7 = vcmask (!%p164_p2), 162944   ;;  %vm2857_vm8 = vcmask (!%p164_p2), 195744  }
   0x8   : > { %4405 = vmatprep.subr.bf16.mxu1 (!%p164_p2), %v4404_v3  ;;  %s4916_s6 = smov (!%p164_p2), 92   ;;  %s4917_s7 = smov (!%p164_p2), 124   ;;  %vm3286_vm9 = vcmask (!%p164_p2), 228544   ;;  %vm3715_vm10 = vcmask (!%p164_p2), 261344  }
   0x9   : > { %4407 = vmatpush3.bf16.msra.mxu1 (!%p164_p2), %v4404_v3  ;;  %s4918_s8 = smov (!%p164_p2), 60   ;;  %s4919_s9 = smov (!%p164_p2), 88  }
   0xa   : > { %4409 = vmatprep.subr.bf16.mxu1 (!%p164_p2), %v4408_v5  ;;  %s4920_s10 = smov (!%p164_p2), 120   ;;  %s4921_s11 = smov (!%p164_p2), 56  }
   0xb   : > { %s4922_s12 = smov (!%p164_p2), 84   ;;  %s4923_s13 = smov (!%p164_p2), 116  }
   0xc   : > { %s4924_s14 = smov (!%p164_p2), 52   ;;  %s4925_s16 = smov (!%p164_p2), 80  }
   0xd   : > { %s5454_s23 = smov (!%p190_p3, %s3897_s23), 7  ;;  %4411 = vmatpush3.bf16.msra.mxu1 %v4408_v5  ;;  %s4926_s17 = smov 112  }
   0xe   : > { %s3898_s26 = sshll.u32 %s5454_s23, 3  ;;  %s4927_s18 = smov 48  }
   0xf   : > { %s193_s29 = scalar_lea.vmem %s5446_s0, %s3898_s26  ;;  %s4928_s19 = smov 76  }
  0x10   : > { %v201_v6 = vld [vmem:[%s193_s29] sm:$0xff]  ;;  %v202_v7 = vld [vmem:[%s193_s29 + $0x8] sm:$0xff]  ;;  %v203_v8 = vld [vmem:[%s193_s29 + $0x10] sm:$0xff]  ;;  %s4929_s20 = smov 108   ;;  %s4930_s21 = smov 44  }
  0x11   : > { %4160 = vmatprep.mubr.msk.f32.mxu1 %vm209_vm0, %v201_v6  ;;  %v204_v9 = vld [vmem:[%s193_s29 + $0x18] sm:$0xff]  ;;  %s4931_s22 = smov 72   ;;  %s4932_s24 = smov 104  }
  0x12   : > { %4161 = vmatmul.mubr.msk.f32.vlgmr.msra.gmra.mrb[0].mxu1 %vm209_vm0, %v202_v7  ;;  %s4933_s25 = smov 40   ;;  %s4934_s27 = smov 68  }
  0x13   : > { %4163 = vmatprep.mubr.msk.f32.mxu1 %vm209_vm0, %v203_v8  ;;  %s4935_s28 = smov 100   ;;  %s4936_s29 = smov 36  }
  0x16   : > { %4164 = vmatmul.mubr.msk.f32.gmra.mrb[2].mxu1 %vm209_vm0, %v204_v9 }
  0xe5   : > { %v5001_v10 = vpop.f32.mrb[0].mxu1 }
  0xe6   : > { %v5003_v11 = vpop.f32.mrb[1].mxu1 }
  0xe7   : > { %4170 = vmatprep.mubr.msk.f32.mxu1 %vm313_vm1, %v5003_v11  ;;  %v5009_v12 = vpack.i.bf16 %v5001_v10, %v5003_v11 }
  0xe9   : > { %4619 = vrot.lane.b32.xlu0 %v5009_v12, %s4914_s30  ;;  %v5012_v13 = vpop.f32.mrb[2].mxu1 }
  0xea   : > { %v5014_v14 = vpop.f32.mrb[3].mxu1 }
  0xeb   : > { %v5018_v15 = vpack.i.bf16 %v5012_v13, %v5014_v14  ;;  %4177 = vmatprep.mubr.msk.f32.mxu0 %vm313_vm1, %v5014_v14 }
  0xed   : > { %4624 = vrot.lane.b32.xlu0 %v5018_v15, %s4914_s30  ;;  %s4937_s30 = smov 4  }
 0x15b   : > { %v4620_v16 = vpop.permute.xlu0 %4619 }
 0x15c   : > { %v4622_v17 = vunpack.i.h.bf16 %v4620_v16  ;;  %v4621_v18 = vunpack.i.l.bf16 %v4620_v16 }
 0x15e   : > { %v4412_v20 = vpack.c.bf16 %v4622_v17, %v4621_v18 }
 0x15f   : > { %v4625_v21 = vpop.permute.xlu0 %4624 }
 0x160   : > { %4414 = vmatprep.subr.msk.bf16.mxu1 %vm5025_vm2, %v4412_v20  ;;  %v4627_v22 = vunpack.i.h.bf16 %v4625_v21  ;;  %v4626_v23 = vunpack.i.l.bf16 %v4625_v21 }
 0x161   : > { %4417 = vmatpush3.bf16.xpose.msk.msra.mxu1 %vm5025_vm2, %v4412_v20 }
 0x162   : > { %v4418_v24 = vpack.c.bf16 %v4627_v22, %v4626_v23 }
 0x164   : > { %4420 = vmatprep.subr.msk.bf16.mxu0 %vm5025_vm2, %v4418_v24 }
 0x165   : > { %4423 = vmatpush3.bf16.xpose.msk.msra.mxu0 %vm5025_vm2, %v4418_v24 }
 0x168   : > { %4171 = vmatmul.mubr.msk.f32.vlgmr.msra.gmra.mrb[4].mxu1 %vm313_vm1, %v5001_v10 }
 0x16c   : > { %4178 = vmatmul.mubr.msk.f32.vlgmr.msra.gmra.mrb[0].mxu0 %vm313_vm1, %v5012_v13 }
 0x23b   : > { %v4172_v25 = vpop.f32.mrb[4].mxu1 }
 0x23c   : > { %v388_v26 = vpop.f32.mrb[5].mxu1  ;;  %v487_v28 = vmul.f32 0.5, %v4172_v25 }
 0x23d   : > { %v486_v27 = vmul.f32 0.5, %v388_v26 }
 0x23e   : > { %v494_v35 = vsel %vm490_vm3, %v487_v28, -inf }
 0x23f   : > { %v4179_v29 = vpop.f32.mrb[0].mxu0  ;;  %v491_v30 = vsel %vm490_vm3, %v486_v27, -inf }
 0x240   : > { %v477_v31 = vpop.f32.mrb[1].mxu0  ;;  %492 = vmax.xlane.f32.xlu1 %v491_v30  ;;  %v489_v33 = vmul.f32 0.5, %v4179_v29 }
 0x241   : > { %v488_v32 = vmul.f32 0.5, %v477_v31 }
 0x242   : > { %v500_v36 = vsel %vm490_vm3, %v489_v33, -inf }
 0x243   : > { %v497_v34 = vsel %vm490_vm3, %v488_v32, -inf }
 0x244   : > { %498 = vmax.xlane.f32.xlu0 %v497_v34  ;;  %495 = vmax.xlane.f32.xlu1 %v494_v35 }
 0x248   : > { %501 = vmax.xlane.f32.xlu1 %v500_v36 }
 0x259   : > { %4629 = vrot.lane.b32.xlu1 %v5009_v12, %s4915_s5 }
 0x25a   : > { %4634 = vrot.lane.b32.xlu0 %v5018_v15, %s4915_s5  ;;  %s4938_s5 = smov 8  }
 0x25d   : > { %4639 = vrot.lane.b32.xlu1 %v5009_v12, %s4916_s6 }
 0x25e   : > { %808 = vrot.lane.b32.xlu0 %v5014_v14, %s4917_s7 }
 0x261   : > { %4644 = vrot.lane.b32.xlu1 %v5018_v15, %s4916_s6  ;;  %s4939_s6 = smov 12  }
 0x265   : > { %717 = vrot.lane.b32.xlu1 %v5003_v11, %s4917_s7 }
 0x269   : > { %719 = vrot.lane.b32.xlu1 %v5001_v10, %s4917_s7 }
 0x2cd   : > { %v493_v37 = vpop.xlane.xlu1 %492 }
 0x2ce   : > { %v503_v38 = vsub.f32 %v486_v27, %v493_v37 }
 0x2d0   : > { %v507_v43 = vmul.f32 1.442695, %v503_v38 }
 0x2d1   : > { %v499_v39 = vpop.xlane.xlu0 %498  ;;  %v496_v40 = vpop.xlane.xlu1 %495 }
 0x2d2   : > { %v504_v41 = vsub.f32 %v487_v28, %v496_v40  ;;  %v505_v47 = vsub.f32 %v488_v32, %v499_v39 }
 0x2d4   : > { %v509_v42 = vmul.f32 1.442695, %v504_v41  ;;  %v511_v55 = vmul.f32 1.442695, %v505_v47 }
 0x2d5   : > { %v502_v44 = vpop.xlane.xlu1 %501  ;;  %v4635_v46 = vpop.permute.xlu0 %4634 }
 0x2d6   : > { %v506_v45 = vsub.f32 %v489_v33, %v502_v44  ;;  %4778 = vpow2.f32 %v509_v42  ;;  %v4637_v50 = vunpack.i.h.bf16 %v4635_v46  ;;  %v4636_v51 = vunpack.i.l.bf16 %v4635_v46 }
 0x2d7   : > { %4780 = vpow2.f32 %v507_v43 }
 0x2d8   : > { %v513_v48 = vmul.f32 1.442695, %v506_v45  ;;  %v4428_v59 = vpack.c.bf16 %v4637_v50, %v4636_v51 }
 0x2d9   : > { %v4630_v49 = vpop.permute.xlu1 %4629  ;;  %v809_v30 = vpop.permute.xlu0 %808 }
 0x2da   : > { %v4632_v52 = vunpack.i.h.bf16 %v4630_v49  ;;  %v4631_v53 = vunpack.i.l.bf16 %v4630_v49  ;;  %4782 = vpow2.f32 %v513_v48 }
 0x2db   : > { %4784 = vpow2.f32 %v511_v55 }
 0x2dc   : > { %v4424_v54 = vpack.c.bf16 %v4632_v52, %v4631_v53 }
 0x2dd   : > { %v4640_v56 = vpop.permute.xlu1 %4639 }
 0x2de   : > { %v4642_v57 = vunpack.i.h.bf16 %v4640_v56  ;;  %v4641_v58 = vunpack.i.l.bf16 %v4640_v56  ;;  %4425 = vmatprep.subr.bf16.mxu1 %v4424_v54 }
 0x2df   : > { %4427 = vmatpush3.bf16.msra.mxu1 %v4424_v54 }
 0x2e0   : > { %v4432_v60 = vpack.c.bf16 %v4642_v57, %v4641_v58  ;;  %4429 = vmatprep.subr.bf16.mxu1 %v4428_v59  ;;  %v4779_v61 = vpop.eup %4778 }
 0x2e1   : > { %v4645_v62 = vpop.permute.xlu1 %4644  ;;  %v518_v63 = vsel %vm490_vm3, %v4779_v61, 0.0  ;;  %v4781_v0 = vpop.eup %4780 }
 0x2e2   : > { %4434 = vmatprep.subr.msk.bf16.mxu0 %vm5025_vm2, %v4432_v60  ;;  %519 = vadd.xlane.f32.xlu1 %v518_v63  ;;  %v515_v2 = vsel %vm490_vm3, %v4781_v0, 0.0  ;;  %v4647_v21 = vunpack.i.h.bf16 %v4645_v62  ;;  %v4646_v22 = vunpack.i.l.bf16 %v4645_v62 }
 0x2e3   : > { %4437 = vmatpush3.bf16.xpose.msk.msra.mxu0 %vm5025_vm2, %v4432_v60 }
 0x2e4   : > { %v4783_v3 = vpop.eup %4782  ;;  %v4438_v25 = vpack.c.bf16 %v4647_v21, %v4646_v22 }
 0x2e5   : > { %v718_v1 = vpop.permute.xlu1 %717  ;;  %v524_v5 = vsel %vm490_vm3, %v4783_v3, 0.0  ;;  %v4785_v6 = vpop.eup %4784 }
 0x2e6   : > { %4198 = vmatprep.mubr.msk.f32.mxu0 %vm313_vm1, %v718_v1  ;;  %516 = vadd.xlane.f32.xlu1 %v515_v2  ;;  %v521_v7 = vsel %vm490_vm3, %v4785_v6, 0.0 }
 0x2e9   : > { %v720_v4 = vpop.permute.xlu1 %719 }
 0x2ea   : > { %4199 = vmatmul.mubr.msk.f32.vlgmr.msra.gmra.mrb[2].mxu0 %vm313_vm1, %v720_v4  ;;  %525 = vadd.xlane.f32.xlu1 %v524_v5 }
 0x2ee   : > { %522 = vadd.xlane.f32.xlu1 %v521_v7 }
 0x2ff   : > { %810 = vrot.lane.b32.xlu1 %v5012_v13, %s4917_s7  ;;  %s4940_s7 = smov 16  }
 0x36f   : > { %v520_v8 = vpop.xlane.xlu1 %519 }
 0x370   : > { %4786 = vrcp.f32 %v520_v8 }
 0x373   : > { %v517_v9 = vpop.xlane.xlu1 %516 }
 0x374   : > { %4788 = vrcp.f32 %v517_v9 }
 0x377   : > { %v526_v16 = vpop.xlane.xlu1 %525 }
 0x378   : > { %4790 = vrcp.f32 %v526_v16 }
 0x37a   : > { %v4787_v18 = vpop.eup %4786 }
 0x37b   : > { %v523_v17 = vpop.xlane.xlu1 %522  ;;  %v536_v24 = vmul.f32 %v4787_v18, %v4779_v61 }
 0x37c   : > { %4792 = vrcp.f32 %v523_v17 }
 0x37e   : > { %v4789_v20 = vpop.eup %4788 }
 0x37f   : > { %v535_v23 = vmul.f32 %v4789_v20, %v4781_v0  ;;  %v811_v31 = vpop.permute.xlu1 %810 }
 0x381   : > { %4184 = vmatprep.mubr.msk.f32.mxu1 %vm490_vm3, %v535_v23 }
 0x382   : > { %4185 = vmatmul.mubr.msk.f32.vlgmr.msra.gmra.mrb[6].mxu1 %vm490_vm3, %v536_v24  ;;  %v4791_v26 = vpop.eup %4790 }
 0x383   : > { %4431 = vmatpush3.bf16.msra.mxu1 %v4428_v59  ;;  %v538_v29 = vmul.f32 %v4791_v26, %v4783_v3 }
 0x384   : > { %4440 = vmatprep.subr.msk.bf16.mxu1 %vm5025_vm2, %v4438_v25 }
 0x386   : > { %v4793_v27 = vpop.eup %4792 }
 0x387   : > { %v537_v28 = vmul.f32 %v4793_v27, %v4785_v6 }
 0x389   : > { %4191 = vmatprep.mubr.msk.f32.mxu1 %vm490_vm3, %v537_v28 }
 0x38a   : > { %4192 = vmatmul.mubr.msk.f32.vlgmr.msra.gmra.mrb[8].mxu1 %vm490_vm3, %v538_v29 }
 0x38b   : > { %4205 = vmatprep.mubr.msk.f32.mxu1 %vm313_vm1, %v809_v30 }
 0x38c   : > { %4443 = vmatpush3.bf16.xpose.msk.msra.mxu1 %vm5025_vm2, %v4438_v25 }
 0x393   : > { %4206 = vmatmul.mubr.msk.f32.vlgmr.msra.gmra.mrb[10].mxu1 %vm313_vm1, %v811_v31 }
 0x3bd   : > { %v4200_v32 = vpop.f32.mrb[2].mxu0 }
 0x3be   : > { %v900_v33 = vmul.f32 0.5, %v4200_v32  ;;  %v799_v34 = vpop.f32.mrb[3].mxu0 }
 0x3bf   : > { %v899_v35 = vmul.f32 0.5, %v799_v34 }
 0x3c0   : > { %v906_v36 = vsel %vm490_vm3, %v900_v33, -inf }
 0x3c1   : > { %907 = vmax.xlane.f32.xlu1 %v906_v36  ;;  %v903_v37 = vsel %vm490_vm3, %v899_v35, -inf }
 0x3c2   : > { %904 = vmax.xlane.f32.xlu0 %v903_v37 }
 0x44e   : > { %v908_v43 = vpop.xlane.xlu1 %907 }
 0x44f   : > { %v905_v38 = vpop.xlane.xlu0 %904  ;;  %v916_v45 = vsub.f32 %v900_v33, %v908_v43 }
 0x450   : > { %v915_v39 = vsub.f32 %v899_v35, %v905_v38 }
 0x451   : > { %v921_v49 = vmul.f32 1.442695, %v916_v45 }
 0x452   : > { %v919_v40 = vmul.f32 1.442695, %v915_v39 }
 0x454   : > { %4794 = vpow2.f32 %v919_v40 }
 0x455   : > { %v4186_v41 = vpop.f32.mrb[6].mxu1  ;;  %4796 = vpow2.f32 %v921_v49 }
 0x456   : > { %714 = vst.msk [vmem:[#allocation2 + $0x8] sm:$0xff] %vm313_vm1, %v4186_v41  ;;  %v617_v42 = vpop.f32.mrb[7].mxu1 }
 0x457   : > { %713 = vst.msk [vmem:[#allocation2] sm:$0xff] %vm313_vm1, %v617_v42 }
 0x45d   : > { %v4193_v46 = vpop.f32.mrb[8].mxu1 }
 0x45e   : > { %v4795_v44 = vpop.eup %4794  ;;  %716 = vst.msk [vmem:[#allocation2 + $0x18] sm:$0xff] %vm313_vm1, %v4193_v46  ;;  %v704_v47 = vpop.f32.mrb[9].mxu1 }
 0x45f   : > { %v927_v48 = vsel %vm490_vm3, %v4795_v44, 0.0  ;;  %715 = vst.msk [vmem:[#allocation2 + $0x10] sm:$0xff] %vm313_vm1, %v704_v47  ;;  %v4797_v56 = vpop.eup %4796 }
 0x460   : > { %928 = vadd.xlane.f32.xlu1 %v927_v48  ;;  %v930_v57 = vsel %vm490_vm3, %v4797_v56, 0.0 }
 0x466   : > { %v4207_v50 = vpop.f32.mrb[10].mxu1 }
 0x467   : > { %v890_v51 = vpop.f32.mrb[11].mxu1  ;;  %v902_v53 = vmul.f32 0.5, %v4207_v50 }
 0x468   : > { %v901_v52 = vmul.f32 0.5, %v890_v51 }
 0x469   : > { %v912_v55 = vsel %vm490_vm3, %v902_v53, -inf }
 0x46a   : > { %v909_v54 = vsel %vm490_vm3, %v901_v52, -inf }
 0x46b   : > { %910 = vmax.xlane.f32.xlu0 %v909_v54 }
 0x46f   : > { %913 = vmax.xlane.f32.xlu0 %v912_v55 }
 0x471   : > { %4649 = vrot.lane.b32.xlu1 %v5009_v12, %s4918_s8 }
 0x473   : > { %931 = vadd.xlane.f32.xlu0 %v930_v57 }
 0x475   : > { %4659 = vrot.lane.b32.xlu1 %v5009_v12, %s4919_s9 }
 0x479   : > { %4664 = vrot.lane.b32.xlu1 %v5018_v15, %s4919_s9  ;;  %s4942_s9 = smov 24  }
 0x47d   : > { %1148 = vrot.lane.b32.xlu1 %v5001_v10, %s4920_s10 }
 0x489   : > { %4654 = vrot.lane.b32.xlu0 %v5018_v15, %s4918_s8  ;;  %s4941_s8 = smov 20  }
 0x4ed   : > { %v929_v58 = vpop.xlane.xlu1 %928 }
 0x4ee   : > { %4798 = vrcp.f32 %v929_v58 }
 0x4f1   : > { %v4650_v59 = vpop.permute.xlu1 %4649 }
 0x4f2   : > { %v4652_v60 = vunpack.i.h.bf16 %v4650_v59  ;;  %v4651_v61 = vunpack.i.l.bf16 %v4650_v59 }
 0x4f4   : > { %v4444_v62 = vpack.c.bf16 %v4652_v60, %v4651_v61 }
 0x4f5   : > { %v4660_v63 = vpop.permute.xlu1 %4659 }
 0x4f6   : > { %v4662_v0 = vunpack.i.h.bf16 %v4660_v63  ;;  %v4661_v1 = vunpack.i.l.bf16 %v4660_v63  ;;  %4445 = vmatprep.subr.bf16.mxu0 %v4444_v62 }
 0x4f7   : > { %4447 = vmatpush3.bf16.msra.mxu0 %v4444_v62 }
 0x4f8   : > { %v4799_v2 = vpop.eup %4798  ;;  %v4452_v3 = vpack.c.bf16 %v4662_v0, %v4661_v1  ;;  %v911_v4 = vpop.xlane.xlu0 %910 }
 0x4f9   : > { %v947_v5 = vmul.f32 %v4799_v2, %v4795_v44  ;;  %v917_v6 = vsub.f32 %v901_v52, %v911_v4  ;;  %v4665_v18 = vpop.permute.xlu1 %4664 }
 0x4fa   : > { %4454 = vmatprep.subr.msk.bf16.mxu0 %vm5025_vm2, %v4452_v3  ;;  %v4667_v21 = vunpack.i.h.bf16 %v4665_v18  ;;  %v4666_v22 = vunpack.i.l.bf16 %v4665_v18 }
 0x4fb   : > { %4212 = vmatprep.mubr.msk.f32.mxu0 %vm490_vm3, %v947_v5  ;;  %v923_v7 = vmul.f32 1.442695, %v917_v6 }
 0x4fc   : > { %v914_v8 = vpop.xlane.xlu0 %913  ;;  %v4458_v28 = vpack.c.bf16 %v4667_v21, %v4666_v22 }
 0x4fd   : > { %4800 = vpow2.f32 %v923_v7  ;;  %v918_v9 = vsub.f32 %v902_v53, %v914_v8  ;;  %v1149_v33 = vpop.permute.xlu1 %1148 }
 0x4ff   : > { %v925_v16 = vmul.f32 1.442695, %v918_v9 }
 0x500   : > { %v932_v17 = vpop.xlane.xlu0 %931 }
 0x501   : > { %4802 = vpow2.f32 %v925_v16 }
 0x502   : > { %4804 = vrcp.f32 %v932_v17 }
 0x504   : > { %v4655_v20 = vpop.permute.xlu0 %4654 }
 0x505   : > { %v4657_v23 = vunpack.i.h.bf16 %v4655_v20  ;;  %v4656_v24 = vunpack.i.l.bf16 %v4655_v20 }
 0x507   : > { %v4801_v25 = vpop.eup %4800  ;;  %v4448_v26 = vpack.c.bf16 %v4657_v23, %v4656_v24 }
 0x508   : > { %v933_v27 = vsel %vm490_vm3, %v4801_v25, 0.0 }
 0x509   : > { %934 = vadd.xlane.f32.xlu1 %v933_v27  ;;  %4449 = vmatprep.subr.bf16.mxu1 %v4448_v26 }
 0x50a   : > { %4451 = vmatpush3.bf16.msra.mxu1 %v4448_v26 }
 0x50b   : > { %v4803_v29 = vpop.eup %4802  ;;  %4460 = vmatprep.subr.msk.bf16.mxu1 %vm5025_vm2, %v4458_v28 }
 0x50c   : > { %v4805_v30 = vpop.eup %4804  ;;  %v936_v31 = vsel %vm490_vm3, %v4803_v29, 0.0 }
 0x50d   : > { %937 = vadd.xlane.f32.xlu0 %v936_v31  ;;  %v948_v32 = vmul.f32 %v4805_v30, %v4797_v56 }
 0x50f   : > { %4213 = vmatmul.mubr.msk.f32.vlgmr.msra.gmra.mrb[4].mxu0 %vm490_vm3, %v948_v32 }
 0x510   : > { %4457 = vmatpush3.bf16.xpose.msk.msra.mxu0 %vm5025_vm2, %v4452_v3 }
 0x51a   : > { %1239 = vrot.lane.b32.xlu1 %v5012_v13, %s4920_s10 }
 0x523   : > { %1146 = vrot.lane.b32.xlu0 %v5003_v11, %s4920_s10 }
 0x527   : > { %1237 = vrot.lane.b32.xlu0 %v5014_v14, %s4920_s10 }
 0x596   : > { %v935_v34 = vpop.xlane.xlu1 %934 }
 0x597   : > { %4806 = vrcp.f32 %v935_v34 }
 0x59a   : > { %v938_v35 = vpop.xlane.xlu0 %937  ;;  %v1240_v42 = vpop.permute.xlu1 %1239 }
 0x59b   : > { %4808 = vrcp.f32 %v938_v35 }
 0x59e   : > { %v1147_v36 = vpop.permute.xlu0 %1146 }
 0x59f   : > { %4226 = vmatprep.mubr.msk.f32.mxu0 %vm313_vm1, %v1147_v36 }
 0x5a0   : > { %4227 = vmatmul.mubr.msk.f32.vlgmr.msra.gmra.mrb[6].mxu0 %vm313_vm1, %v1149_v33 }
 0x5a1   : > { %v4807_v37 = vpop.eup %4806 }
 0x5a2   : > { %v949_v38 = vmul.f32 %v4807_v37, %v4801_v25  ;;  %v1238_v41 = vpop.permute.xlu0 %1237 }
 0x5a4   : > { %4219 = vmatprep.mubr.msk.f32.mxu1 %vm490_vm3, %v949_v38 }
 0x5a5   : > { %v4809_v39 = vpop.eup %4808 }
 0x5a6   : > { %v950_v40 = vmul.f32 %v4809_v39, %v4803_v29 }
 0x5a8   : > { %4220 = vmatmul.mubr.msk.f32.vlgmr.msra.gmra.mrb[12].mxu1 %vm490_vm3, %v950_v40 }
 0x5a9   : > { %4463 = vmatpush3.bf16.xpose.msk.msra.mxu1 %vm5025_vm2, %v4458_v28  ;;  %4233 = vmatprep.mubr.msk.f32.mxu1 %vm313_vm1, %v1238_v41 }
 0x5b0   : > { %4234 = vmatmul.mubr.msk.f32.vlgmr.msra.gmra.mrb[14].mxu1 %vm313_vm1, %v1240_v42 }
 0x5e2   : > { %v5117_v43 = vpop.f32.mrb[4].mxu0 }
 0x5e3   : > { %v5119_v44 = vpop.f32.mrb[5].mxu0 }
 0x673   : > { %v4228_v45 = vpop.f32.mrb[6].mxu0 }
 0x674   : > { %v1329_v46 = vmul.f32 0.5, %v4228_v45  ;;  %v1228_v47 = vpop.f32.mrb[7].mxu0 }
 0x675   : > { %v1328_v48 = vmul.f32 0.5, %v1228_v47 }
 0x676   : > { %v1335_v49 = vsel %vm490_vm3, %v1329_v46, -inf }
 0x677   : > { %1336 = vmax.xlane.f32.xlu1 %v1335_v49  ;;  %v1332_v50 = vsel %vm490_vm3, %v1328_v48, -inf }
 0x678   : > { %1333 = vmax.xlane.f32.xlu0 %v1332_v50 }
 0x67b   : > { %v5123_v51 = vpop.f32.mrb[12].mxu1 }
 0x67c   : > { %v5125_v52 = vpop.f32.mrb[13].mxu1 }
 0x683   : > { %v4235_v53 = vpop.f32.mrb[14].mxu1 }
 0x684   : > { %v1319_v54 = vpop.f32.mrb[15].mxu1  ;;  %v1331_v56 = vmul.f32 0.5, %v4235_v53 }
 0x685   : > { %v1330_v55 = vmul.f32 0.5, %v1319_v54 }
 0x686   : > { %v1341_v58 = vsel %vm490_vm3, %v1331_v56, -inf }
 0x687   : > { %v1338_v57 = vsel %vm490_vm3, %v1330_v55, -inf }
 0x688   : > { %1339 = vmax.xlane.f32.xlu0 %v1338_v57 }
 0x68c   : > { %1342 = vmax.xlane.f32.xlu0 %v1341_v58 }
 0x704   : > { %v1337_v59 = vpop.xlane.xlu1 %1336 }
 0x705   : > { %v1345_v60 = vsub.f32 %v1329_v46, %v1337_v59  ;;  %v1334_v61 = vpop.xlane.xlu0 %1333 }
 0x706   : > { %v1344_v62 = vsub.f32 %v1328_v48, %v1334_v61 }
 0x707   : > { %v1350_v63 = vmul.f32 1.442695, %v1345_v60 }
 0x708   : > { %v1348_v0 = vmul.f32 1.442695, %v1344_v62 }
 0x709   : > { %4810 = vpow2.f32 %v1350_v63 }
 0x70a   : > { %4812 = vpow2.f32 %v1348_v0 }
 0x713   : > { %v4811_v1 = vpop.eup %4810 }
 0x714   : > { %v4813_v2 = vpop.eup %4812  ;;  %v1359_v3 = vsel %vm490_vm3, %v4811_v1, 0.0 }
 0x715   : > { %1360 = vadd.xlane.f32.xlu0 %v1359_v3  ;;  %v1356_v4 = vsel %vm490_vm3, %v4813_v2, 0.0  ;;  %v1340_v5 = vpop.xlane.xlu0 %1339 }
 0x716   : > { %1357 = vadd.xlane.f32.xlu1 %v1356_v4  ;;  %v1346_v9 = vsub.f32 %v1330_v55, %v1340_v5 }
 0x718   : > { %v1352_v16 = vmul.f32 1.442695, %v1346_v9 }
 0x719   : > { %v1343_v6 = vpop.xlane.xlu0 %1342 }
 0x71a   : > { %v1347_v7 = vsub.f32 %v1331_v56, %v1343_v6 }
 0x71c   : > { %v1354_v8 = vmul.f32 1.442695, %v1347_v7 }
 0x71e   : > { %4814 = vpow2.f32 %v1354_v8 }
 0x71f   : > { %4816 = vpow2.f32 %v1352_v16 }
 0x727   : > { %4669 = vrot.lane.b32.xlu1 %v5009_v12, %s4921_s11 }
 0x728   : > { %v4815_v17 = vpop.eup %4814 }
 0x729   : > { %v1365_v18 = vsel %vm490_vm3, %v4815_v17, 0.0  ;;  %v4817_v20 = vpop.eup %4816 }
 0x72a   : > { %v1362_v21 = vsel %vm490_vm3, %v4817_v20, 0.0 }
 0x72b   : > { %4679 = vrot.lane.b32.xlu1 %v5009_v12, %s4922_s12  ;;  %4674 = vrot.lane.b32.xlu0 %v5018_v15, %s4921_s11 }
 0x72f   : > { %4684 = vrot.lane.b32.xlu1 %v5018_v15, %s4922_s12 }
 0x733   : > { %1577 = vrot.lane.b32.xlu1 %v5001_v10, %s4923_s13 }
 0x74a   : > { %1366 = vadd.xlane.f32.xlu0 %v1365_v18 }
 0x757   : > { %1363 = vadd.xlane.f32.xlu1 %v1362_v21 }
 0x760   : > { %1575 = vrot.lane.b32.xlu0 %v5003_v11, %s4923_s13 }
 0x764   : > { %1666 = vrot.lane.b32.xlu0 %v5014_v14, %s4923_s13 }
 0x768   : > { %1668 = vrot.lane.b32.xlu1 %v5012_v13, %s4923_s13 }
 0x7a2   : > { %v1361_v22 = vpop.xlane.xlu0 %1360 }
 0x7a3   : > { %4818 = vrcp.f32 %v1361_v22  ;;  %v1358_v23 = vpop.xlane.xlu1 %1357 }
 0x7a4   : > { %4820 = vrcp.f32 %v1358_v23 }
 0x7a6   : > { %v4675_v24 = vpop.permute.xlu0 %4674 }
 0x7a7   : > { %v4677_v25 = vunpack.i.h.bf16 %v4675_v24  ;;  %v4676_v26 = vunpack.i.l.bf16 %v4675_v24  ;;  %v4670_v27 = vpop.permute.xlu1 %4669 }
 0x7a8   : > { %v4672_v28 = vunpack.i.h.bf16 %v4670_v27  ;;  %v4671_v29 = vunpack.i.l.bf16 %v4670_v27 }
 0x7a9   : > { %v4468_v30 = vpack.c.bf16 %v4677_v25, %v4676_v26 }
 0x7aa   : > { %v4464_v31 = vpack.c.bf16 %v4672_v28, %v4671_v29 }
 0x7ab   : > { %v4680_v32 = vpop.permute.xlu1 %4679  ;;  %4469 = vmatprep.subr.bf16.mxu1 %v4468_v30 }
 0x7ac   : > { %v4682_v33 = vunpack.i.h.bf16 %v4680_v32  ;;  %v4681_v34 = vunpack.i.l.bf16 %v4680_v32  ;;  %4465 = vmatprep.subr.bf16.mxu0 %v4464_v31  ;;  %4471 = vmatpush3.bf16.msra.mxu1 %v4468_v30 }
 0x7ad   : > { %v4819_v35 = vpop.eup %4818  ;;  %4467 = vmatpush3.bf16.msra.mxu0 %v4464_v31 }
 0x7ae   : > { %v4821_v36 = vpop.eup %4820  ;;  %v4472_v37 = vpack.c.bf16 %v4682_v33, %v4681_v34  ;;  %v1377_v42 = vmul.f32 %v4819_v35, %v4811_v1 }
 0x7af   : > { %v4685_v38 = vpop.permute.xlu1 %4684  ;;  %v1376_v39 = vmul.f32 %v4821_v36, %v4813_v2 }
 0x7b0   : > { %v4687_v40 = vunpack.i.h.bf16 %v4685_v38  ;;  %v4686_v41 = vunpack.i.l.bf16 %v4685_v38  ;;  %4474 = vmatprep.subr.msk.bf16.mxu0 %vm5025_vm2, %v4472_v37 }
 0x7b1   : > { %4240 = vmatprep.mubr.msk.f32.mxu0 %vm490_vm3, %v1376_v39 }
 0x7b2   : > { %v4478_v45 = vpack.c.bf16 %v4687_v40, %v4686_v41  ;;  %4241 = vmatmul.mubr.msk.f32.vlgmr.msra.gmra.mrb[8].mxu0 %vm490_vm3, %v1377_v42 }
 0x7b3   : > { %v1578_v48 = vpop.permute.xlu1 %1577 }
 0x7b4   : > { %4480 = vmatprep.subr.msk.bf16.mxu1 %vm5025_vm2, %v4478_v45 }
 0x7b6   : > { %4477 = vmatpush3.bf16.xpose.msk.msra.mxu0 %vm5025_vm2, %v4472_v37 }
 0x7d7   : > { %v1367_v46 = vpop.xlane.xlu0 %1366 }
 0x7d8   : > { %4822 = vrcp.f32 %v1367_v46 }
 0x7db   : > { %v1576_v47 = vpop.permute.xlu0 %1575 }
 0x7dc   : > { %4254 = vmatprep.mubr.msk.f32.mxu0 %vm313_vm1, %v1576_v47 }
 0x7dd   : > { %4255 = vmatmul.mubr.msk.f32.vlgmr.msra.gmra.mrb[10].mxu0 %vm313_vm1, %v1578_v48 }
 0x7df   : > { %v1667_v56 = vpop.permute.xlu0 %1666 }
 0x7e2   : > { %v4823_v50 = vpop.eup %4822 }
 0x7e3   : > { %v1379_v55 = vmul.f32 %v4823_v50, %v4815_v17 }
 0x7e4   : > { %v1364_v49 = vpop.xlane.xlu1 %1363 }
 0x7e5   : > { %4824 = vrcp.f32 %v1364_v49 }
 0x7e8   : > { %v1669_v57 = vpop.permute.xlu1 %1668 }
 0x7ef   : > { %v4825_v53 = vpop.eup %4824 }
 0x7f0   : > { %v1378_v54 = vmul.f32 %v4825_v53, %v4817_v20 }
 0x7f2   : > { %4247 = vmatprep.mubr.msk.f32.mxu1 %vm490_vm3, %v1378_v54 }
 0x7f3   : > { %4248 = vmatmul.mubr.msk.f32.vlgmr.msra.gmra.mrb[16].mxu1 %vm490_vm3, %v1379_v55 }
 0x7f4   : > { %4483 = vmatpush3.bf16.xpose.msk.msra.mxu1 %vm5025_vm2, %v4478_v45  ;;  %4261 = vmatprep.mubr.msk.f32.mxu1 %vm313_vm1, %v1667_v56 }
 0x7fb   : > { %4262 = vmatmul.mubr.msk.f32.vlgmr.msra.gmra.mrb[18].mxu1 %vm313_vm1, %v1669_v57 }
 0x885   : > { %v5157_v58 = vpop.f32.mrb[8].mxu0 }
 0x886   : > { %v5159_v59 = vpop.f32.mrb[9].mxu0 }
 0x8b0   : > { %v4256_v60 = vpop.f32.mrb[10].mxu0 }
 0x8b1   : > { %v1758_v61 = vmul.f32 0.5, %v4256_v60  ;;  %v1657_v62 = vpop.f32.mrb[11].mxu0 }
 0x8b2   : > { %v1757_v63 = vmul.f32 0.5, %v1657_v62 }
 0x8b3   : > { %v1764_v0 = vsel %vm490_vm3, %v1758_v61, -inf }
 0x8b4   : > { %1765 = vmax.xlane.f32.xlu1 %v1764_v0  ;;  %v1761_v1 = vsel %vm490_vm3, %v1757_v63, -inf }
 0x8b5   : > { %1762 = vmax.xlane.f32.xlu0 %v1761_v1 }
 0x8c6   : > { %v5163_v2 = vpop.f32.mrb[16].mxu1 }
 0x8c7   : > { %v5165_v3 = vpop.f32.mrb[17].mxu1 }
 0x8ce   : > { %v4263_v4 = vpop.f32.mrb[18].mxu1 }
 0x8cf   : > { %v1748_v5 = vpop.f32.mrb[19].mxu1  ;;  %v1760_v7 = vmul.f32 0.5, %v4263_v4 }
 0x8d0   : > { %v1759_v6 = vmul.f32 0.5, %v1748_v5 }
 0x8d1   : > { %v1770_v9 = vsel %vm490_vm3, %v1760_v7, -inf }
 0x8d2   : > { %v1767_v8 = vsel %vm490_vm3, %v1759_v6, -inf }
 0x8d3   : > { %1768 = vmax.xlane.f32.xlu0 %v1767_v8 }
 0x8d7   : > { %1771 = vmax.xlane.f32.xlu0 %v1770_v9 }
 0x941   : > { %v1766_v16 = vpop.xlane.xlu1 %1765 }
 0x942   : > { %v1774_v17 = vsub.f32 %v1758_v61, %v1766_v16  ;;  %v1763_v18 = vpop.xlane.xlu0 %1762 }
 0x943   : > { %v1773_v20 = vsub.f32 %v1757_v63, %v1763_v18 }
 0x944   : > { %v1779_v21 = vmul.f32 1.442695, %v1774_v17 }
 0x945   : > { %v1777_v22 = vmul.f32 1.442695, %v1773_v20 }
 0x946   : > { %4826 = vpow2.f32 %v1779_v21 }
 0x947   : > { %4828 = vpow2.f32 %v1777_v22 }
 0x950   : > { %v4827_v23 = vpop.eup %4826 }
 0x951   : > { %v4829_v24 = vpop.eup %4828  ;;  %v1788_v25 = vsel %vm490_vm3, %v4827_v23, 0.0 }
 0x952   : > { %1789 = vadd.xlane.f32.xlu0 %v1788_v25  ;;  %v1785_v26 = vsel %vm490_vm3, %v4829_v24, 0.0 }
 0x953   : > { %1786 = vadd.xlane.f32.xlu1 %v1785_v26 }
 0x960   : > { %v1769_v27 = vpop.xlane.xlu0 %1768 }
 0x961   : > { %v1775_v31 = vsub.f32 %v1759_v6, %v1769_v27 }
 0x963   : > { %v1781_v32 = vmul.f32 1.442695, %v1775_v31 }
 0x964   : > { %4689 = vrot.lane.b32.xlu1 %v5009_v12, %s4924_s14  ;;  %v1772_v28 = vpop.xlane.xlu0 %1771 }
 0x965   : > { %v1776_v29 = vsub.f32 %v1760_v7, %v1772_v28 }
 0x967   : > { %v1783_v30 = vmul.f32 1.442695, %v1776_v29 }
 0x968   : > { %4699 = vrot.lane.b32.xlu1 %v5009_v12, %s4925_s16  ;;  %4694 = vrot.lane.b32.xlu0 %v5018_v15, %s4924_s14 }
 0x969   : > { %4830 = vpow2.f32 %v1783_v30 }
 0x96a   : > { %4832 = vpow2.f32 %v1781_v32 }
 0x96c   : > { %4704 = vrot.lane.b32.xlu1 %v5018_v15, %s4925_s16 }
 0x970   : > { %2006 = vrot.lane.b32.xlu1 %v5001_v10, %s4926_s17 }
 0x973   : > { %v4831_v33 = vpop.eup %4830 }
 0x974   : > { %v1794_v34 = vsel %vm490_vm3, %v4831_v33, 0.0  ;;  %v4833_v35 = vpop.eup %4832 }
 0x975   : > { %v1791_v36 = vsel %vm490_vm3, %v4833_v35, 0.0 }
 0x987   : > { %1795 = vadd.xlane.f32.xlu0 %v1794_v34 }
 0x994   : > { %1792 = vadd.xlane.f32.xlu1 %v1791_v36 }
 0x99d   : > { %2004 = vrot.lane.b32.xlu0 %v5003_v11, %s4926_s17 }
 0x9a1   : > { %2095 = vrot.lane.b32.xlu0 %v5014_v14, %s4926_s17 }
 0x9a5   : > { %2097 = vrot.lane.b32.xlu1 %v5012_v13, %s4926_s17 }
 0x9df   : > { %v1790_v37 = vpop.xlane.xlu0 %1789 }
 0x9e0   : > { %4834 = vrcp.f32 %v1790_v37  ;;  %v1787_v38 = vpop.xlane.xlu1 %1786 }
 0x9e1   : > { %4836 = vrcp.f32 %v1787_v38 }
 0x9e3   : > { %v4695_v39 = vpop.permute.xlu0 %4694 }
 0x9e4   : > { %v4697_v40 = vunpack.i.h.bf16 %v4695_v39  ;;  %v4696_v41 = vunpack.i.l.bf16 %v4695_v39  ;;  %v4690_v42 = vpop.permute.xlu1 %4689 }
 0x9e5   : > { %v4692_v45 = vunpack.i.h.bf16 %v4690_v42  ;;  %v4691_v46 = vunpack.i.l.bf16 %v4690_v42 }
 0x9e6   : > { %v4488_v47 = vpack.c.bf16 %v4697_v40, %v4696_v41 }
 0x9e7   : > { %v4484_v48 = vpack.c.bf16 %v4692_v45, %v4691_v46 }
 0x9e8   : > { %v4700_v49 = vpop.permute.xlu1 %4699  ;;  %4489 = vmatprep.subr.bf16.mxu1 %v4488_v47 }
 0x9e9   : > { %v4702_v50 = vunpack.i.h.bf16 %v4700_v49  ;;  %v4701_v53 = vunpack.i.l.bf16 %v4700_v49  ;;  %4485 = vmatprep.subr.bf16.mxu0 %v4484_v48  ;;  %4491 = vmatpush3.bf16.msra.mxu1 %v4488_v47 }
 0x9ea   : > { %v4835_v54 = vpop.eup %4834  ;;  %4487 = vmatpush3.bf16.msra.mxu0 %v4484_v48 }
 0x9eb   : > { %v4837_v55 = vpop.eup %4836  ;;  %v4492_v56 = vpack.c.bf16 %v4702_v50, %v4701_v53  ;;  %v1806_v61 = vmul.f32 %v4835_v54, %v4827_v23 }
 0x9ec   : > { %v4705_v57 = vpop.permute.xlu1 %4704  ;;  %v1805_v60 = vmul.f32 %v4837_v55, %v4829_v24 }
 0x9ed   : > { %v4707_v62 = vunpack.i.h.bf16 %v4705_v57  ;;  %v4706_v63 = vunpack.i.l.bf16 %v4705_v57  ;;  %4494 = vmatprep.subr.msk.bf16.mxu0 %vm5025_vm2, %v4492_v56 }
 0x9ee   : > { %4268 = vmatprep.mubr.msk.f32.mxu0 %vm490_vm3, %v1805_v60 }
 0x9ef   : > { %v4498_v0 = vpack.c.bf16 %v4707_v62, %v4706_v63  ;;  %4269 = vmatmul.mubr.msk.f32.vlgmr.msra.gmra.mrb[12].mxu0 %vm490_vm3, %v1806_v61 }
 0x9f0   : > { %v2007_v5 = vpop.permute.xlu1 %2006 }
 0x9f1   : > { %4500 = vmatprep.subr.msk.bf16.mxu1 %vm5025_vm2, %v4498_v0 }
 0x9f3   : > { %4497 = vmatpush3.bf16.xpose.msk.msra.mxu0 %vm5025_vm2, %v4492_v56 }
 0xa14   : > { %v1796_v1 = vpop.xlane.xlu0 %1795 }
 0xa15   : > { %4838 = vrcp.f32 %v1796_v1 }
 0xa18   : > { %v2005_v4 = vpop.permute.xlu0 %2004 }
 0xa19   : > { %4282 = vmatprep.mubr.msk.f32.mxu0 %vm313_vm1, %v2005_v4 }
 0xa1a   : > { %4283 = vmatmul.mubr.msk.f32.vlgmr.msra.gmra.mrb[14].mxu0 %vm313_vm1, %v2007_v5 }
 0xa1c   : > { %v2096_v17 = vpop.permute.xlu0 %2095 }
 0xa1f   : > { %v4839_v7 = vpop.eup %4838 }
 0xa20   : > { %v1808_v16 = vmul.f32 %v4839_v7, %v4831_v33 }
 0xa21   : > { %v1793_v6 = vpop.xlane.xlu1 %1792 }
 0xa22   : > { %4840 = vrcp.f32 %v1793_v6 }
 0xa25   : > { %v2098_v18 = vpop.permute.xlu1 %2097 }
 0xa2c   : > { %v4841_v8 = vpop.eup %4840 }
 0xa2d   : > { %v1807_v9 = vmul.f32 %v4841_v8, %v4833_v35 }
 0xa2f   : > { %4275 = vmatprep.mubr.msk.f32.mxu1 %vm490_vm3, %v1807_v9 }
 0xa30   : > { %4276 = vmatmul.mubr.msk.f32.vlgmr.msra.gmra.mrb[20].mxu1 %vm490_vm3, %v1808_v16 }
 0xa31   : > { %4503 = vmatpush3.bf16.xpose.msk.msra.mxu1 %vm5025_vm2, %v4498_v0  ;;  %4289 = vmatprep.mubr.msk.f32.mxu1 %vm313_vm1, %v2096_v17 }
 0xa38   : > { %4290 = vmatmul.mubr.msk.f32.vlgmr.msra.gmra.mrb[22].mxu1 %vm313_vm1, %v2098_v18 }
 0xac2   : > { %v5197_v20 = vpop.f32.mrb[12].mxu0 }
 0xac3   : > { %v5199_v21 = vpop.f32.mrb[13].mxu0 }
 0xaed   : > { %v4284_v22 = vpop.f32.mrb[14].mxu0 }
 0xaee   : > { %v2187_v23 = vmul.f32 0.5, %v4284_v22  ;;  %v2086_v24 = vpop.f32.mrb[15].mxu0 }
 0xaef   : > { %v2186_v25 = vmul.f32 0.5, %v2086_v24 }
 0xaf0   : > { %v2193_v26 = vsel %vm490_vm3, %v2187_v23, -inf }
 0xaf1   : > { %2194 = vmax.xlane.f32.xlu1 %v2193_v26  ;;  %v2190_v27 = vsel %vm490_vm3, %v2186_v25, -inf }
 0xaf2   : > { %2191 = vmax.xlane.f32.xlu0 %v2190_v27 }
 0xb03   : > { %v5203_v28 = vpop.f32.mrb[20].mxu1 }
 0xb04   : > { %v5205_v29 = vpop.f32.mrb[21].mxu1 }
 0xb0b   : > { %v4291_v30 = vpop.f32.mrb[22].mxu1 }
 0xb0c   : > { %v2177_v31 = vpop.f32.mrb[23].mxu1  ;;  %v2189_v33 = vmul.f32 0.5, %v4291_v30 }
 0xb0d   : > { %v2188_v32 = vmul.f32 0.5, %v2177_v31 }
 0xb0e   : > { %v2199_v35 = vsel %vm490_vm3, %v2189_v33, -inf }
 0xb0f   : > { %v2196_v34 = vsel %vm490_vm3, %v2188_v32, -inf }
 0xb10   : > { %2197 = vmax.xlane.f32.xlu0 %v2196_v34 }
 0xb14   : > { %2200 = vmax.xlane.f32.xlu0 %v2199_v35 }
 0xb7e   : > { %v2195_v36 = vpop.xlane.xlu1 %2194 }
 0xb7f   : > { %v2203_v37 = vsub.f32 %v2187_v23, %v2195_v36  ;;  %v2192_v38 = vpop.xlane.xlu0 %2191 }
 0xb80   : > { %v2202_v39 = vsub.f32 %v2186_v25, %v2192_v38 }
 0xb81   : > { %v2208_v40 = vmul.f32 1.442695, %v2203_v37 }
 0xb82   : > { %v2206_v41 = vmul.f32 1.442695, %v2202_v39 }
 0xb83   : > { %4842 = vpow2.f32 %v2208_v40 }
 0xb84   : > { %4844 = vpow2.f32 %v2206_v41 }
 0xb8d   : > { %v4843_v42 = vpop.eup %4842 }
 0xb8e   : > { %v4845_v45 = vpop.eup %4844  ;;  %v2217_v46 = vsel %vm490_vm3, %v4843_v42, 0.0 }
 0xb8f   : > { %2218 = vadd.xlane.f32.xlu0 %v2217_v46  ;;  %v2214_v47 = vsel %vm490_vm3, %v4845_v45, 0.0 }
 0xb90   : > { %2215 = vadd.xlane.f32.xlu1 %v2214_v47 }
 0xb9d   : > { %v2198_v48 = vpop.xlane.xlu0 %2197 }
 0xb9e   : > { %v2204_v54 = vsub.f32 %v2188_v32, %v2198_v48 }
 0xba0   : > { %v2210_v55 = vmul.f32 1.442695, %v2204_v54 }
 0xba1   : > { %4709 = vrot.lane.b32.xlu1 %v5009_v12, %s4927_s18  ;;  %v2201_v49 = vpop.xlane.xlu0 %2200 }
 0xba2   : > { %v2205_v50 = vsub.f32 %v2189_v33, %v2201_v49 }
 0xba4   : > { %v2212_v53 = vmul.f32 1.442695, %v2205_v50 }
 0xba5   : > { %4719 = vrot.lane.b32.xlu1 %v5009_v12, %s4928_s19  ;;  %4714 = vrot.lane.b32.xlu0 %v5018_v15, %s4927_s18 }
 0xba6   : > { %4846 = vpow2.f32 %v2212_v53 }
 0xba7   : > { %4848 = vpow2.f32 %v2210_v55 }
 0xba9   : > { %4724 = vrot.lane.b32.xlu1 %v5018_v15, %s4928_s19  ;;  %s4943_s19 = smov 28  }
 0xbad   : > { %2435 = vrot.lane.b32.xlu1 %v5001_v10, %s4929_s20 }
 0xbb0   : > { %v4847_v56 = vpop.eup %4846 }
 0xbb1   : > { %v2223_v57 = vsel %vm490_vm3, %v4847_v56, 0.0  ;;  %v4849_v60 = vpop.eup %4848 }
 0xbb2   : > { %v2220_v61 = vsel %vm490_vm3, %v4849_v60, 0.0 }
 0xbc4   : > { %2224 = vadd.xlane.f32.xlu0 %v2223_v57 }
 0xbd1   : > { %2221 = vadd.xlane.f32.xlu1 %v2220_v61 }
 0xbda   : > { %2433 = vrot.lane.b32.xlu0 %v5003_v11, %s4929_s20 }
 0xbde   : > { %2524 = vrot.lane.b32.xlu0 %v5014_v14, %s4929_s20 }
 0xbe2   : > { %2526 = vrot.lane.b32.xlu1 %v5012_v13, %s4929_s20 }
 0xc1c   : > { %v2219_v62 = vpop.xlane.xlu0 %2218 }
 0xc1d   : > { %4850 = vrcp.f32 %v2219_v62  ;;  %v2216_v63 = vpop.xlane.xlu1 %2215 }
 0xc1e   : > { %4852 = vrcp.f32 %v2216_v63 }
 0xc20   : > { %v4715_v0 = vpop.permute.xlu0 %4714 }
 0xc21   : > { %v4717_v1 = vunpack.i.h.bf16 %v4715_v0  ;;  %v4716_v4 = vunpack.i.l.bf16 %v4715_v0  ;;  %v4710_v5 = vpop.permute.xlu1 %4709 }
 0xc22   : > { %v4712_v6 = vunpack.i.h.bf16 %v4710_v5  ;;  %v4711_v7 = vunpack.i.l.bf16 %v4710_v5 }
 0xc23   : > { %v4508_v8 = vpack.c.bf16 %v4717_v1, %v4716_v4 }
 0xc24   : > { %v4504_v9 = vpack.c.bf16 %v4712_v6, %v4711_v7 }
 0xc25   : > { %v4720_v16 = vpop.permute.xlu1 %4719  ;;  %4509 = vmatprep.subr.bf16.mxu1 %v4508_v8 }
 0xc26   : > { %v4722_v17 = vunpack.i.h.bf16 %v4720_v16  ;;  %v4721_v18 = vunpack.i.l.bf16 %v4720_v16  ;;  %4505 = vmatprep.subr.bf16.mxu0 %v4504_v9  ;;  %4511 = vmatpush3.bf16.msra.mxu1 %v4508_v8 }
 0xc27   : > { %v4851_v22 = vpop.eup %4850  ;;  %4507 = vmatpush3.bf16.msra.mxu0 %v4504_v9 }
 0xc28   : > { %v4853_v23 = vpop.eup %4852  ;;  %v4512_v24 = vpack.c.bf16 %v4722_v17, %v4721_v18  ;;  %v2235_v27 = vmul.f32 %v4851_v22, %v4843_v42 }
 0xc29   : > { %v4725_v25 = vpop.permute.xlu1 %4724  ;;  %v2234_v26 = vmul.f32 %v4853_v23, %v4845_v45 }
 0xc2a   : > { %v4727_v30 = vunpack.i.h.bf16 %v4725_v25  ;;  %v4726_v31 = vunpack.i.l.bf16 %v4725_v25  ;;  %4514 = vmatprep.subr.msk.bf16.mxu0 %vm5025_vm2, %v4512_v24 }
 0xc2b   : > { %4296 = vmatprep.mubr.msk.f32.mxu0 %vm490_vm3, %v2234_v26 }
 0xc2c   : > { %v4518_v32 = vpack.c.bf16 %v4727_v30, %v4726_v31  ;;  %4297 = vmatmul.mubr.msk.f32.vlgmr.msra.gmra.mrb[16].mxu0 %vm490_vm3, %v2235_v27 }
 0xc2d   : > { %v2436_v35 = vpop.permute.xlu1 %2435 }
 0xc2e   : > { %4520 = vmatprep.subr.msk.bf16.mxu1 %vm5025_vm2, %v4518_v32 }
 0xc30   : > { %4517 = vmatpush3.bf16.xpose.msk.msra.mxu0 %vm5025_vm2, %v4512_v24 }
 0xc51   : > { %v2225_v33 = vpop.xlane.xlu0 %2224 }
 0xc52   : > { %4854 = vrcp.f32 %v2225_v33 }
 0xc55   : > { %v2434_v34 = vpop.permute.xlu0 %2433 }
 0xc56   : > { %4310 = vmatprep.mubr.msk.f32.mxu0 %vm313_vm1, %v2434_v34 }
 0xc57   : > { %4311 = vmatmul.mubr.msk.f32.vlgmr.msra.gmra.mrb[18].mxu0 %vm313_vm1, %v2436_v35 }
 0xc59   : > { %v2525_v41 = vpop.permute.xlu0 %2524 }
 0xc5c   : > { %v4855_v37 = vpop.eup %4854 }
 0xc5d   : > { %v2237_v40 = vmul.f32 %v4855_v37, %v4847_v56 }
 0xc5e   : > { %v2222_v36 = vpop.xlane.xlu1 %2221 }
 0xc5f   : > { %4856 = vrcp.f32 %v2222_v36 }
 0xc62   : > { %v2527_v42 = vpop.permute.xlu1 %2526 }
 0xc69   : > { %v4857_v38 = vpop.eup %4856 }
 0xc6a   : > { %v2236_v39 = vmul.f32 %v4857_v38, %v4849_v60 }
 0xc6c   : > { %4303 = vmatprep.mubr.msk.f32.mxu1 %vm490_vm3, %v2236_v39 }
 0xc6d   : > { %4304 = vmatmul.mubr.msk.f32.vlgmr.msra.gmra.mrb[24].mxu1 %vm490_vm3, %v2237_v40 }
 0xc6e   : > { %4523 = vmatpush3.bf16.xpose.msk.msra.mxu1 %vm5025_vm2, %v4518_v32  ;;  %4317 = vmatprep.mubr.msk.f32.mxu1 %vm313_vm1, %v2525_v41 }
 0xc75   : > { %4318 = vmatmul.mubr.msk.f32.vlgmr.msra.gmra.mrb[26].mxu1 %vm313_vm1, %v2527_v42 }
 0xcff   : > { %v5237_v45 = vpop.f32.mrb[16].mxu0 }
 0xd00   : > { %v5239_v46 = vpop.f32.mrb[17].mxu0 }
 0xd2a   : > { %v4312_v47 = vpop.f32.mrb[18].mxu0 }
 0xd2b   : > { %v2616_v48 = vmul.f32 0.5, %v4312_v47  ;;  %v2515_v49 = vpop.f32.mrb[19].mxu0 }
 0xd2c   : > { %v2615_v50 = vmul.f32 0.5, %v2515_v49 }
 0xd2d   : > { %v2622_v53 = vsel %vm490_vm3, %v2616_v48, -inf }
 0xd2e   : > { %2623 = vmax.xlane.f32.xlu1 %v2622_v53  ;;  %v2619_v54 = vsel %vm490_vm3, %v2615_v50, -inf }
 0xd2f   : > { %2620 = vmax.xlane.f32.xlu0 %v2619_v54 }
 0xd40   : > { %v5243_v55 = vpop.f32.mrb[24].mxu1 }
 0xd41   : > { %v5245_v56 = vpop.f32.mrb[25].mxu1 }
 0xd48   : > { %v4319_v57 = vpop.f32.mrb[26].mxu1 }
 0xd49   : > { %v2606_v60 = vpop.f32.mrb[27].mxu1  ;;  %v2618_v62 = vmul.f32 0.5, %v4319_v57 }
 0xd4a   : > { %v2617_v61 = vmul.f32 0.5, %v2606_v60 }
 0xd4b   : > { %v2628_v0 = vsel %vm490_vm3, %v2618_v62, -inf }
 0xd4c   : > { %v2625_v63 = vsel %vm490_vm3, %v2617_v61, -inf }
 0xd4d   : > { %2626 = vmax.xlane.f32.xlu0 %v2625_v63 }
 0xd51   : > { %2629 = vmax.xlane.f32.xlu0 %v2628_v0 }
 0xdbb   : > { %v2624_v1 = vpop.xlane.xlu1 %2623 }
 0xdbc   : > { %v2632_v4 = vsub.f32 %v2616_v48, %v2624_v1  ;;  %v2621_v5 = vpop.xlane.xlu0 %2620 }
 0xdbd   : > { %v2631_v6 = vsub.f32 %v2615_v50, %v2621_v5 }
 0xdbe   : > { %v2637_v7 = vmul.f32 1.442695, %v2632_v4 }
 0xdbf   : > { %v2635_v8 = vmul.f32 1.442695, %v2631_v6 }
 0xdc0   : > { %4858 = vpow2.f32 %v2637_v7 }
 0xdc1   : > { %4860 = vpow2.f32 %v2635_v8 }
 0xdca   : > { %v4859_v9 = vpop.eup %4858 }
 0xdcb   : > { %v4861_v16 = vpop.eup %4860  ;;  %v2646_v17 = vsel %vm490_vm3, %v4859_v9, 0.0 }
 0xdcc   : > { %2647 = vadd.xlane.f32.xlu0 %v2646_v17  ;;  %v2643_v18 = vsel %vm490_vm3, %v4861_v16, 0.0 }
 0xdcd   : > { %2644 = vadd.xlane.f32.xlu1 %v2643_v18 }
 0xdda   : > { %v2627_v22 = vpop.xlane.xlu0 %2626 }
 0xddb   : > { %v2633_v26 = vsub.f32 %v2617_v61, %v2627_v22 }
 0xddd   : > { %v2639_v27 = vmul.f32 1.442695, %v2633_v26 }
 0xdde   : > { %4729 = vrot.lane.b32.xlu1 %v5009_v12, %s4930_s21  ;;  %v2630_v23 = vpop.xlane.xlu0 %2629 }
 0xddf   : > { %v2634_v24 = vsub.f32 %v2618_v62, %v2630_v23 }
 0xde1   : > { %v2641_v25 = vmul.f32 1.442695, %v2634_v24 }
 0xde2   : > { %4739 = vrot.lane.b32.xlu1 %v5009_v12, %s4931_s22  ;;  %4734 = vrot.lane.b32.xlu0 %v5018_v15, %s4930_s21 }
 0xde3   : > { %4862 = vpow2.f32 %v2641_v25 }
 0xde4   : > { %4864 = vpow2.f32 %v2639_v27 }
 0xde6   : > { %4744 = vrot.lane.b32.xlu1 %v5018_v15, %s4931_s22 }
 0xdea   : > { %2864 = vrot.lane.b32.xlu1 %v5001_v10, %s4932_s24 }
 0xded   : > { %v4863_v30 = vpop.eup %4862 }
 0xdee   : > { %v2652_v31 = vsel %vm490_vm3, %v4863_v30, 0.0  ;;  %v4865_v32 = vpop.eup %4864 }
 0xdef   : > { %v2649_v33 = vsel %vm490_vm3, %v4865_v32, 0.0 }
 0xe01   : > { %2653 = vadd.xlane.f32.xlu0 %v2652_v31 }
 0xe0e   : > { %2650 = vadd.xlane.f32.xlu1 %v2649_v33 }
 0xe17   : > { %2862 = vrot.lane.b32.xlu0 %v5003_v11, %s4932_s24 }
 0xe1b   : > { %2953 = vrot.lane.b32.xlu0 %v5014_v14, %s4932_s24 }
 0xe1f   : > { %2955 = vrot.lane.b32.xlu1 %v5012_v13, %s4932_s24 }
 0xe59   : > { %v2648_v34 = vpop.xlane.xlu0 %2647 }
 0xe5a   : > { %4866 = vrcp.f32 %v2648_v34  ;;  %v2645_v35 = vpop.xlane.xlu1 %2644 }
 0xe5b   : > { %4868 = vrcp.f32 %v2645_v35 }
 0xe5d   : > { %v4735_v36 = vpop.permute.xlu0 %4734 }
 0xe5e   : > { %v4737_v37 = vunpack.i.h.bf16 %v4735_v36  ;;  %v4736_v38 = vunpack.i.l.bf16 %v4735_v36  ;;  %v4730_v39 = vpop.permute.xlu1 %4729 }
 0xe5f   : > { %v4732_v40 = vunpack.i.h.bf16 %v4730_v39  ;;  %v4731_v41 = vunpack.i.l.bf16 %v4730_v39 }
 0xe60   : > { %v4528_v42 = vpack.c.bf16 %v4737_v37, %v4736_v38 }
 0xe61   : > { %v4524_v47 = vpack.c.bf16 %v4732_v40, %v4731_v41 }
 0xe62   : > { %v4740_v48 = vpop.permute.xlu1 %4739  ;;  %4529 = vmatprep.subr.bf16.mxu1 %v4528_v42 }
 0xe63   : > { %v4742_v49 = vunpack.i.h.bf16 %v4740_v48  ;;  %v4741_v50 = vunpack.i.l.bf16 %v4740_v48  ;;  %4525 = vmatprep.subr.bf16.mxu0 %v4524_v47  ;;  %4531 = vmatpush3.bf16.msra.mxu1 %v4528_v42 }
 0xe64   : > { %v4867_v53 = vpop.eup %4866  ;;  %4527 = vmatpush3.bf16.msra.mxu0 %v4524_v47 }
 0xe65   : > { %v4869_v54 = vpop.eup %4868  ;;  %v4532_v57 = vpack.c.bf16 %v4742_v49, %v4741_v50  ;;  %v2664_v62 = vmul.f32 %v4867_v53, %v4859_v9 }
 0xe66   : > { %v4745_v60 = vpop.permute.xlu1 %4744  ;;  %v2663_v61 = vmul.f32 %v4869_v54, %v4861_v16 }
 0xe67   : > { %v4747_v63 = vunpack.i.h.bf16 %v4745_v60  ;;  %v4746_v0 = vunpack.i.l.bf16 %v4745_v60  ;;  %4534 = vmatprep.subr.msk.bf16.mxu0 %vm5025_vm2, %v4532_v57 }
 0xe68   : > { %4324 = vmatprep.mubr.msk.f32.mxu0 %vm490_vm3, %v2663_v61 }
 0xe69   : > { %v4538_v1 = vpack.c.bf16 %v4747_v63, %v4746_v0  ;;  %4325 = vmatmul.mubr.msk.f32.vlgmr.msra.gmra.mrb[20].mxu0 %vm490_vm3, %v2664_v62 }
 0xe6a   : > { %v2865_v6 = vpop.permute.xlu1 %2864 }
 0xe6b   : > { %4540 = vmatprep.subr.msk.bf16.mxu1 %vm5025_vm2, %v4538_v1 }
 0xe6d   : > { %4537 = vmatpush3.bf16.xpose.msk.msra.mxu0 %vm5025_vm2, %v4532_v57 }
 0xe8e   : > { %v2654_v4 = vpop.xlane.xlu0 %2653 }
 0xe8f   : > { %4870 = vrcp.f32 %v2654_v4 }
 0xe92   : > { %v2863_v5 = vpop.permute.xlu0 %2862 }
 0xe93   : > { %4338 = vmatprep.mubr.msk.f32.mxu0 %vm313_vm1, %v2863_v5 }
 0xe94   : > { %4339 = vmatmul.mubr.msk.f32.vlgmr.msra.gmra.mrb[22].mxu0 %vm313_vm1, %v2865_v6 }
 0xe96   : > { %v2954_v18 = vpop.permute.xlu0 %2953 }
 0xe99   : > { %v4871_v8 = vpop.eup %4870 }
 0xe9a   : > { %v2666_v17 = vmul.f32 %v4871_v8, %v4863_v30 }
 0xe9b   : > { %v2651_v7 = vpop.xlane.xlu1 %2650 }
 0xe9c   : > { %4872 = vrcp.f32 %v2651_v7 }
 0xe9f   : > { %v2956_v22 = vpop.permute.xlu1 %2955 }
 0xea6   : > { %v4873_v9 = vpop.eup %4872 }
 0xea7   : > { %v2665_v16 = vmul.f32 %v4873_v9, %v4865_v32 }
 0xea9   : > { %4331 = vmatprep.mubr.msk.f32.mxu1 %vm490_vm3, %v2665_v16 }
 0xeaa   : > { %4332 = vmatmul.mubr.msk.f32.vlgmr.msra.gmra.mrb[28].mxu1 %vm490_vm3, %v2666_v17 }
 0xeab   : > { %4543 = vmatpush3.bf16.xpose.msk.msra.mxu1 %vm5025_vm2, %v4538_v1  ;;  %4345 = vmatprep.mubr.msk.f32.mxu1 %vm313_vm1, %v2954_v18 }
 0xeb2   : > { %4346 = vmatmul.mubr.msk.f32.vlgmr.msra.gmra.mrb[30].mxu1 %vm313_vm1, %v2956_v22 }
 0xf3c   : > { %v5277_v23 = vpop.f32.mrb[20].mxu0 }
 0xf3d   : > { %v5279_v24 = vpop.f32.mrb[21].mxu0 }
 0xf67   : > { %v4340_v25 = vpop.f32.mrb[22].mxu0 }
 0xf68   : > { %v3045_v26 = vmul.f32 0.5, %v4340_v25  ;;  %v2944_v27 = vpop.f32.mrb[23].mxu0 }
 0xf69   : > { %v3044_v30 = vmul.f32 0.5, %v2944_v27 }
 0xf6a   : > { %v3051_v31 = vsel %vm490_vm3, %v3045_v26, -inf }
 0xf6b   : > { %3052 = vmax.xlane.f32.xlu1 %v3051_v31  ;;  %v3048_v32 = vsel %vm490_vm3, %v3044_v30, -inf }
 0xf6c   : > { %3049 = vmax.xlane.f32.xlu0 %v3048_v32 }
 0xf7d   : > { %v5283_v33 = vpop.f32.mrb[28].mxu1 }
 0xf7e   : > { %v5285_v34 = vpop.f32.mrb[29].mxu1 }
 0xf85   : > { %v4347_v35 = vpop.f32.mrb[30].mxu1 }
 0xf86   : > { %v3035_v36 = vpop.f32.mrb[31].mxu1  ;;  %v3047_v38 = vmul.f32 0.5, %v4347_v35 }
 0xf87   : > { %v3046_v37 = vmul.f32 0.5, %v3035_v36 }
 0xf88   : > { %v3057_v40 = vsel %vm490_vm3, %v3047_v38, -inf }
 0xf89   : > { %v3054_v39 = vsel %vm490_vm3, %v3046_v37, -inf }
 0xf8a   : > { %3055 = vmax.xlane.f32.xlu0 %v3054_v39 }
 0xf8e   : > { %3058 = vmax.xlane.f32.xlu0 %v3057_v40 }
 0xff8   : > { %v3053_v41 = vpop.xlane.xlu1 %3052 }
 0xff9   : > { %v3061_v42 = vsub.f32 %v3045_v26, %v3053_v41  ;;  %v3050_v47 = vpop.xlane.xlu0 %3049 }
 0xffa   : > { %v3060_v48 = vsub.f32 %v3044_v30, %v3050_v47 }
 0xffb   : > { %v3066_v49 = vmul.f32 1.442695, %v3061_v42 }
 0xffc   : > { %v3064_v50 = vmul.f32 1.442695, %v3060_v48 }
 0xffd   : > { %4874 = vpow2.f32 %v3066_v49 }
 0xffe   : > { %4876 = vpow2.f32 %v3064_v50 }
0x1007   : > { %v4875_v53 = vpop.eup %4874 }
0x1008   : > { %v4877_v54 = vpop.eup %4876  ;;  %v3075_v57 = vsel %vm490_vm3, %v4875_v53, 0.0 }
0x1009   : > { %3076 = vadd.xlane.f32.xlu0 %v3075_v57  ;;  %v3072_v60 = vsel %vm490_vm3, %v4877_v54, 0.0 }
0x100a   : > { %3073 = vadd.xlane.f32.xlu1 %v3072_v60 }
0x1017   : > { %v3056_v61 = vpop.xlane.xlu0 %3055 }
0x1018   : > { %v3062_v1 = vsub.f32 %v3046_v37, %v3056_v61 }
0x101a   : > { %v3068_v4 = vmul.f32 1.442695, %v3062_v1 }
0x101b   : > { %4749 = vrot.lane.b32.xlu1 %v5009_v12, %s4933_s25  ;;  %v3059_v62 = vpop.xlane.xlu0 %3058 }
0x101c   : > { %v3063_v63 = vsub.f32 %v3047_v38, %v3059_v62 }
0x101e   : > { %v3070_v0 = vmul.f32 1.442695, %v3063_v63 }
0x101f   : > { %4759 = vrot.lane.b32.xlu1 %v5009_v12, %s4934_s27  ;;  %4754 = vrot.lane.b32.xlu0 %v5018_v15, %s4933_s25  ;;  %s199_s25 = scalar_lea.vmem %s5450_s4, %s3898_s26 }
0x1020   : > { %4878 = vpow2.f32 %v3070_v0 }
0x1021   : > { %4880 = vpow2.f32 %v3068_v4 }
0x1023   : > { %4764 = vrot.lane.b32.xlu1 %v5018_v15, %s4934_s27 }
0x1027   : > { %3293 = vrot.lane.b32.xlu1 %v5001_v10, %s4935_s28 }
0x102a   : > { %v4879_v5 = vpop.eup %4878 }
0x102b   : > { %v3081_v6 = vsel %vm490_vm3, %v4879_v5, 0.0  ;;  %v4881_v7 = vpop.eup %4880 }
0x102c   : > { %v3078_v8 = vsel %vm490_vm3, %v4881_v7, 0.0 }
0x103e   : > { %3082 = vadd.xlane.f32.xlu0 %v3081_v6 }
0x104b   : > { %3079 = vadd.xlane.f32.xlu1 %v3078_v8 }
0x1054   : > { %3291 = vrot.lane.b32.xlu0 %v5003_v11, %s4935_s28 }
0x1058   : > { %3382 = vrot.lane.b32.xlu0 %v5014_v14, %s4935_s28 }
0x105c   : > { %3384 = vrot.lane.b32.xlu1 %v5012_v13, %s4935_s28 }
0x1096   : > { %v3077_v10 = vpop.xlane.xlu0 %3076 }
0x1097   : > { %4882 = vrcp.f32 %v3077_v10  ;;  %v3074_v9 = vpop.xlane.xlu1 %3073 }
0x1098   : > { %4884 = vrcp.f32 %v3074_v9 }
0x109a   : > { %v4755_v16 = vpop.permute.xlu0 %4754 }
0x109b   : > { %v4757_v17 = vunpack.i.h.bf16 %v4755_v16  ;;  %v4756_v18 = vunpack.i.l.bf16 %v4755_v16  ;;  %v4750_v22 = vpop.permute.xlu1 %4749 }
0x109c   : > { %v4752_v25 = vunpack.i.h.bf16 %v4750_v22  ;;  %v4751_v26 = vunpack.i.l.bf16 %v4750_v22 }
0x109d   : > { %v4548_v27 = vpack.c.bf16 %v4757_v17, %v4756_v18 }
0x109e   : > { %v4544_v30 = vpack.c.bf16 %v4752_v25, %v4751_v26 }
0x109f   : > { %v4760_v31 = vpop.permute.xlu1 %4759  ;;  %4549 = vmatprep.subr.bf16.mxu1 %v4548_v27 }
0x10a0   : > { %v4762_v32 = vunpack.i.h.bf16 %v4760_v31  ;;  %v4761_v11 = vunpack.i.l.bf16 %v4760_v31  ;;  %4545 = vmatprep.subr.bf16.mxu0 %v4544_v30  ;;  %4551 = vmatpush3.bf16.msra.mxu1 %v4548_v27 }
0x10a1   : > { %v4883_v14 = vpop.eup %4882  ;;  %4547 = vmatpush3.bf16.msra.mxu0 %v4544_v30 }
0x10a2   : > { %v4885_v13 = vpop.eup %4884  ;;  %v4552_v35 = vpack.c.bf16 %v4762_v32, %v4761_v11  ;;  %v3093_v38 = vmul.f32 %v4883_v14, %v4875_v53 }
0x10a3   : > { %v4765_v36 = vpop.permute.xlu1 %4764  ;;  %v3092_v37 = vmul.f32 %v4885_v13, %v4877_v54 }
0x10a4   : > { %v4767_v39 = vunpack.i.h.bf16 %v4765_v36  ;;  %v4766_v40 = vunpack.i.l.bf16 %v4765_v36  ;;  %4554 = vmatprep.subr.msk.bf16.mxu0 %vm5025_vm2, %v4552_v35 }
0x10a5   : > { %4352 = vmatprep.mubr.msk.f32.mxu0 %vm490_vm3, %v3092_v37 }
0x10a6   : > { %v4558_v41 = vpack.c.bf16 %v4767_v39, %v4766_v40  ;;  %4353 = vmatmul.mubr.msk.f32.vlgmr.msra.gmra.mrb[24].mxu0 %vm490_vm3, %v3093_v38 }
0x10a7   : > { %v3294_v48 = vpop.permute.xlu1 %3293 }
0x10a8   : > { %4560 = vmatprep.subr.msk.bf16.mxu1 %vm5025_vm2, %v4558_v41 }
0x10aa   : > { %4557 = vmatpush3.bf16.xpose.msk.msra.mxu0 %vm5025_vm2, %v4552_v35 }
0x10cb   : > { %v3083_v42 = vpop.xlane.xlu0 %3082 }
0x10cc   : > { %4886 = vrcp.f32 %v3083_v42 }
0x10cf   : > { %v3292_v47 = vpop.permute.xlu0 %3291 }
0x10d0   : > { %4366 = vmatprep.mubr.msk.f32.mxu0 %vm313_vm1, %v3292_v47 }
0x10d1   : > { %4367 = vmatmul.mubr.msk.f32.vlgmr.msra.gmra.mrb[26].mxu0 %vm313_vm1, %v3294_v48 }
0x10d3   : > { %v3383_v60 = vpop.permute.xlu0 %3382 }
0x10d6   : > { %v4887_v50 = vpop.eup %4886 }
0x10d7   : > { %v3095_v57 = vmul.f32 %v4887_v50, %v4879_v5 }
0x10d8   : > { %v3080_v49 = vpop.xlane.xlu1 %3079 }
0x10d9   : > { %4888 = vrcp.f32 %v3080_v49 }
0x10dc   : > { %v3385_v61 = vpop.permute.xlu1 %3384 }
0x10e3   : > { %v4889_v53 = vpop.eup %4888 }
0x10e4   : > { %v3094_v54 = vmul.f32 %v4889_v53, %v4881_v7 }
0x10e6   : > { %4359 = vmatprep.mubr.msk.f32.mxu1 %vm490_vm3, %v3094_v54 }
0x10e7   : > { %4360 = vmatmul.mubr.msk.f32.vlgmr.msra.gmra.mrb[32].mxu1 %vm490_vm3, %v3095_v57 }
0x10e8   : > { %4563 = vmatpush3.bf16.xpose.msk.msra.mxu1 %vm5025_vm2, %v4558_v41  ;;  %4373 = vmatprep.mubr.msk.f32.mxu1 %vm313_vm1, %v3383_v60 }
0x10ef   : > { %4374 = vmatmul.mubr.msk.f32.vlgmr.msra.gmra.mrb[34].mxu1 %vm313_vm1, %v3385_v61 }
0x1179   : > { %v5317_v62 = vpop.f32.mrb[24].mxu0 }
0x117a   : > { %v5319_v63 = vpop.f32.mrb[25].mxu0 }
0x11a4   : > { %v4368_v0 = vpop.f32.mrb[26].mxu0 }
0x11a5   : > { %v3474_v1 = vmul.f32 0.5, %v4368_v0  ;;  %v3373_v4 = vpop.f32.mrb[27].mxu0 }
0x11a6   : > { %v3473_v5 = vmul.f32 0.5, %v3373_v4 }
0x11a7   : > { %v3480_v6 = vsel %vm490_vm3, %v3474_v1, -inf }
0x11a8   : > { %3481 = vmax.xlane.f32.xlu1 %v3480_v6  ;;  %v3477_v7 = vsel %vm490_vm3, %v3473_v5, -inf }
0x11a9   : > { %3478 = vmax.xlane.f32.xlu0 %v3477_v7 }
0x11ba   : > { %v5323_v19 = vpop.f32.mrb[32].mxu1 }
0x11bb   : > { %v5325_v8 = vpop.f32.mrb[33].mxu1 }
0x11c2   : > { %v4375_v10 = vpop.f32.mrb[34].mxu1 }
0x11c3   : > { %v3464_v9 = vpop.f32.mrb[35].mxu1  ;;  %v3476_v17 = vmul.f32 0.5, %v4375_v10 }
0x11c4   : > { %v3475_v16 = vmul.f32 0.5, %v3464_v9 }
0x11c5   : > { %v3486_v22 = vsel %vm490_vm3, %v3476_v17, -inf }
0x11c6   : > { %v3483_v18 = vsel %vm490_vm3, %v3475_v16, -inf }
0x11c7   : > { %3484 = vmax.xlane.f32.xlu0 %v3483_v18 }
0x11cb   : > { %3487 = vmax.xlane.f32.xlu0 %v3486_v22 }
0x1235   : > { %v3482_v25 = vpop.xlane.xlu1 %3481 }
0x1236   : > { %v3490_v26 = vsub.f32 %v3474_v1, %v3482_v25  ;;  %v3479_v27 = vpop.xlane.xlu0 %3478  ;;  %v3724_v25 = vld [vmem:[%s5448_s2] sm:$0xff] }
0x1237   : > { %v3489_v30 = vsub.f32 %v3473_v5, %v3479_v27 }
0x1238   : > { %v3495_v31 = vmul.f32 1.442695, %v3490_v26  ;;  %v3725_v26 = vld [vmem:[%s5448_s2 + $0x8] sm:$0xff] }
0x1239   : > { %v3493_v32 = vmul.f32 1.442695, %v3489_v30  ;;  %v4572_v27 = vpack.c.bf16 %v3725_v26, %v3724_v25  ;;  %v3726_v30 = vld [vmem:[%s5448_s2 + $0x10] sm:$0xff] }
0x123a   : > { %4890 = vpow2.f32 %v3495_v31  ;;  %v3727_v31 = vld [vmem:[%s5448_s2 + $0x18] sm:$0xff] }
0x123b   : > { %4892 = vpow2.f32 %v3493_v32  ;;  %v4576_v32 = vpack.c.bf16 %v3727_v31, %v3726_v30 }
0x1244   : > { %v5329_v11 = vpop.eup %4890 }
0x1245   : > { %v4893_v14 = vpop.eup %4892  ;;  %v3504_v13 = vsel %vm490_vm3, %v5329_v11, 0.0 }
0x1246   : > { %3505 = vadd.xlane.f32.xlu0 %v3504_v13  ;;  %v3501_v35 = vsel %vm490_vm3, %v4893_v14, 0.0 }
0x1247   : > { %3502 = vadd.xlane.f32.xlu1 %v3501_v35 }
0x1254   : > { %v3485_v36 = vpop.xlane.xlu0 %3484 }
0x1255   : > { %v3491_v37 = vsub.f32 %v3475_v16, %v3485_v36 }
0x1257   : > { %v3497_v38 = vmul.f32 1.442695, %v3491_v37 }
0x1258   : > { %v3488_v39 = vpop.xlane.xlu0 %3487 }
0x1259   : > { %4894 = vpow2.f32 %v3497_v38  ;;  %v3492_v40 = vsub.f32 %v3476_v17, %v3488_v39 }
0x125b   : > { %v3499_v41 = vmul.f32 1.442695, %v3492_v40 }
0x125d   : > { %4896 = vpow2.f32 %v3499_v41 }
0x1263   : > { %v5334_v42 = vpop.eup %4894 }
0x1264   : > { %v3507_v47 = vsel %vm490_vm3, %v5334_v42, 0.0 }
0x1265   : > { %3508 = vadd.xlane.f32.xlu1 %v3507_v47 }
0x1267   : > { %v5338_v48 = vpop.eup %4896 }
0x1268   : > { %v3510_v49 = vsel %vm490_vm3, %v5338_v48, 0.0 }
0x1269   : > { %3511 = vadd.xlane.f32.xlu0 %v3510_v49 }
0x1276   : > { %4769 = vrot.lane.b32.xlu1 %v5009_v12, %s4936_s29 }
0x127a   : > { %1129 = vrot.lane.b32.xlu1 %v5119_v44, %s4937_s30 }
0x127e   : > { %1131 = vrot.lane.b32.xlu1 %v5117_v43, %s4937_s30 }
0x127f   : > { %4774 = vrot.lane.b32.xlu0 %v5018_v15, %s4936_s29 }
0x1282   : > { %1560 = vrot.lane.b32.xlu1 %v5157_v58, %s4938_s5 }
0x1283   : > { %1558 = vrot.lane.b32.xlu0 %v5159_v59, %s4938_s5 }
0x1286   : > { %1989 = vrot.lane.b32.xlu1 %v5197_v20, %s4939_s6 }
0x1287   : > { %1987 = vrot.lane.b32.xlu0 %v5199_v21, %s4939_s6 }
0x128a   : > { %1133 = vrot.lane.b32.xlu1 %v5125_v52, %s4937_s30 }
0x128b   : > { %2416 = vrot.lane.b32.xlu0 %v5239_v46, %s4940_s7 }
0x128e   : > { %2845 = vrot.lane.b32.xlu1 %v5279_v24, %s4941_s8 }
0x128f   : > { %2418 = vrot.lane.b32.xlu0 %v5237_v45, %s4940_s7 }
0x1292   : > { %1562 = vrot.lane.b32.xlu1 %v5165_v3, %s4938_s5 }
0x1293   : > { %1135 = vrot.lane.b32.xlu0 %v5123_v51, %s4937_s30 }
0x1296   : > { %3274 = vrot.lane.b32.xlu1 %v5319_v63, %s4942_s9 }
0x1297   : > { %2847 = vrot.lane.b32.xlu0 %v5277_v23, %s4941_s8 }
0x129a   : > { %1991 = vrot.lane.b32.xlu1 %v5205_v29, %s4939_s6 }
0x129b   : > { %1564 = vrot.lane.b32.xlu0 %v5163_v2, %s4938_s5 }
0x129f   : > { %3276 = vrot.lane.b32.xlu0 %v5317_v62, %s4942_s9 }
0x12a3   : > { %1993 = vrot.lane.b32.xlu0 %v5203_v28, %s4939_s6 }
0x12d3   : > { %v3506_v44 = vpop.xlane.xlu0 %3505 }
0x12d4   : > { %v3503_v12 = vpop.xlane.xlu1 %3502 }
0x12d5   : > { %4898 = vrcp.f32 %v3503_v12 }
0x12d6   : > { %4900 = vrcp.f32 %v3506_v44 }
0x12df   : > { %v4899_v15 = vpop.eup %4898 }
0x12e0   : > { %v3521_v43 = vmul.f32 %v4899_v15, %v4893_v14  ;;  %v4901_v20 = vpop.eup %4900 }
0x12e1   : > { %v3522_v23 = vmul.f32 %v4901_v20, %v5329_v11 }
0x12e2   : > { %4380 = vmatprep.mubr.msk.f32.mxu0 %vm490_vm3, %v3521_v43 }
0x12f2   : > { %v3509_v51 = vpop.xlane.xlu1 %3508 }
0x12f3   : > { %4902 = vrcp.f32 %v3509_v51 }
0x12f6   : > { %v4770_v52 = vpop.permute.xlu1 %4769  ;;  %v3512_v58 = vpop.xlane.xlu0 %3511 }
0x12f7   : > { %v4772_v59 = vunpack.i.h.bf16 %v4770_v52  ;;  %v4771_v3 = vunpack.i.l.bf16 %v4770_v52  ;;  %4904 = vrcp.f32 %v3512_v58 }
0x12f9   : > { %v4564_v2 = vpack.c.bf16 %v4772_v59, %v4771_v3 }
0x12fa   : > { %v1130_v21 = vpop.permute.xlu1 %1129  ;;  %v4775_v28 = vpop.permute.xlu0 %4774 }
0x12fb   : > { %1142 = vst.msk [vmem:[#allocation2] sm:$0xff] %vm1141_vm4, %v1130_v21  ;;  %v4777_v29 = vunpack.i.h.bf16 %v4775_v28  ;;  %v4776_v45 = vunpack.i.l.bf16 %v4775_v28  ;;  %4565 = vmatprep.subr.bf16.mxu0 %v4564_v2 }
0x12fc   : > { %4567 = vmatpush3.bf16.msra.mxu0 %v4564_v2 }
0x12fd   : > { %v4903_v46 = vpop.eup %4902  ;;  %v4568_v24 = vpack.c.bf16 %v4777_v29, %v4776_v45  ;;  %4573 = vmatprep.subr.bf16.mxu0 %v4572_v27 }
0x12fe   : > { %v1132_v50 = vpop.permute.xlu1 %1131  ;;  %v1559_v53 = vpop.permute.xlu0 %1558  ;;  %v3523_v54 = vmul.f32 %v4903_v46, %v5334_v42 }
0x12ff   : > { %1143 = vst.msk [vmem:[#allocation2 + $0x8] sm:$0xff] %vm1141_vm4, %v1132_v50  ;;  %4381 = vmatmul.mubr.msk.f32.vlgmr.msra.gmra.mrb[28].mxu0 %vm490_vm3, %v3522_v23  ;;  %4569 = vmatprep.subr.bf16.mxu1 %v4568_v24 }
0x1300   : > { %1571 = vst.msk [vmem:[#allocation2] sm:$0xff] %vm1570_vm5, %v1559_v53  ;;  %4571 = vmatpush3.bf16.msra.mxu1 %v4568_v24  ;;  %4387 = vmatprep.mubr.msk.f32.mxu1 %vm490_vm3, %v3523_v54 }
0x1301   : > { %v4905_v57 = vpop.eup %4904  ;;  %4575 = vmatpush3.bf16.msra.mxu0 %v4572_v27 }
0x1302   : > { %v3524_v60 = vmul.f32 %v4905_v57, %v5338_v48  ;;  %v1561_v61 = vpop.permute.xlu1 %1560  ;;  %v1988_v62 = vpop.permute.xlu0 %1987  ;;  %4577 = vmatprep.subr.bf16.mxu0 %v4576_v32  ;;  %v4001_v48 = vld [vmem:[%s5449_s3] ss:$0 sm:$0xff] }
0x1303   : > { %1572 = vst.msk [vmem:[#allocation2 + $0x8] sm:$0xff] %vm1570_vm5, %v1561_v61 }
0x1304   : > { %2000 = vst.msk [vmem:[#allocation2] sm:$0xff] %vm1999_vm6, %v1988_v62  ;;  %4388 = vmatmul.mubr.msk.f32.vlgmr.msra.gmra.mrb[36].mxu1 %vm490_vm3, %v3524_v60 }
0x1305   : > { %4579 = vmatpush3.bf16.msra.mxu0 %v4576_v32 }
0x1306   : > { %v1990_v63 = vpop.permute.xlu1 %1989  ;;  %v2417_v0 = vpop.permute.xlu0 %2416 }
0x1307   : > { %2001 = vst.msk [vmem:[#allocation2 + $0x8] sm:$0xff] %vm1999_vm6, %v1990_v63 }
0x1308   : > { %2429 = vst.msk [vmem:[#allocation2] sm:$0xff] %vm2428_vm7, %v2417_v0 }
0x130a   : > { %v1134_v1 = vpop.permute.xlu1 %1133  ;;  %v2419_v4 = vpop.permute.xlu0 %2418 }
0x130b   : > { %1144 = vst.msk [vmem:[#allocation2 + $0x10] sm:$0xff] %vm1141_vm4, %v1134_v1 }
0x130c   : > { %2430 = vst.msk [vmem:[#allocation2 + $0x8] sm:$0xff] %vm2428_vm7, %v2419_v4 }
0x130e   : > { %v2846_v5 = vpop.permute.xlu1 %2845  ;;  %v1136_v6 = vpop.permute.xlu0 %1135 }
0x130f   : > { %2858 = vst.msk [vmem:[#allocation2] sm:$0xff] %vm2857_vm8, %v2846_v5 }
0x1310   : > { %1145 = vst.msk [vmem:[#allocation2 + $0x18] sm:$0xff] %vm1141_vm4, %v1136_v6 }
0x1312   : > { %v1563_v7 = vpop.permute.xlu1 %1562  ;;  %v2848_v10 = vpop.permute.xlu0 %2847 }
0x1313   : > { %1573 = vst.msk [vmem:[#allocation2 + $0x10] sm:$0xff] %vm1570_vm5, %v1563_v7 }
0x1314   : > { %2859 = vst.msk [vmem:[#allocation2 + $0x8] sm:$0xff] %vm2857_vm8, %v2848_v10 }
0x1316   : > { %v3275_v9 = vpop.permute.xlu1 %3274  ;;  %v1565_v16 = vpop.permute.xlu0 %1564 }
0x1317   : > { %3287 = vst.msk [vmem:[#allocation2] sm:$0xff] %vm3286_vm9, %v3275_v9 }
0x1318   : > { %1574 = vst.msk [vmem:[#allocation2 + $0x18] sm:$0xff] %vm1570_vm5, %v1565_v16 }
0x131a   : > { %v1992_v17 = vpop.permute.xlu1 %1991  ;;  %v3277_v18 = vpop.permute.xlu0 %3276 }
0x131b   : > { %2002 = vst.msk [vmem:[#allocation2 + $0x10] sm:$0xff] %vm1999_vm6, %v1992_v17 }
0x131c   : > { %3288 = vst.msk [vmem:[#allocation2 + $0x8] sm:$0xff] %vm3286_vm9, %v3277_v18 }
0x131e   : > { %v1994_v22 = vpop.permute.xlu0 %1993 }
0x131f   : > { %2003 = vst.msk [vmem:[#allocation2 + $0x18] sm:$0xff] %vm1999_vm6, %v1994_v22 }
0x13d2   : > { %v4382_v11 = vpop.f32.mrb[28].mxu0 }
0x13d3   : > { %3705 = vrot.lane.b32.xlu0 %v4382_v11, %s4943_s19  ;;  %v3603_v14 = vpop.f32.mrb[29].mxu0 }
0x13d4   : > { %3703 = vrot.lane.b32.xlu1 %v3603_v14, %s4943_s19 }
0x13d7   : > { %2849 = vrot.lane.b32.xlu0 %v5285_v34, %s4941_s8  ;;  %v4389_v13 = vpop.f32.mrb[36].mxu1 }
0x13d8   : > { %2420 = vrot.lane.b32.xlu1 %v5245_v56, %s4940_s7  ;;  %v3690_v35 = vpop.f32.mrb[37].mxu1 }
0x13db   : > { %3278 = vrot.lane.b32.xlu0 %v5325_v8, %s4942_s9 }
0x13dc   : > { %2422 = vrot.lane.b32.xlu1 %v5243_v55, %s4940_s7 }
0x13df   : > { %3707 = vrot.lane.b32.xlu0 %v3690_v35, %s4943_s19 }
0x13e0   : > { %2851 = vrot.lane.b32.xlu1 %v5283_v33, %s4941_s8 }
0x13e4   : > { %3280 = vrot.lane.b32.xlu1 %v5323_v19, %s4942_s9 }
0x13e8   : > { %3709 = vrot.lane.b32.xlu1 %v4389_v13, %s4943_s19 }
0x1445   : > { %v3706_v34 = vpop.permute.xlu0 %3705 }
0x1446   : > { %3717 = vst.msk [vmem:[#allocation2 + $0x8] sm:$0xff] %vm3715_vm10, %v3706_v34  ;;  %v3704_v56 = vpop.permute.xlu1 %3703 }
0x1447   : > { %3716 = vst.msk [vmem:[#allocation2] sm:$0xff] %vm3715_vm10, %v3704_v56 }
0x1449   : > { %v2850_v36 = vpop.permute.xlu0 %2849 }
0x144a   : > { %v2421_v8 = vpop.permute.xlu1 %2420 }
0x144b   : > { %2431 = vst.msk [vmem:[#allocation2 + $0x10] sm:$0xff] %vm2428_vm7, %v2421_v8 }
0x144c   : > { %2860 = vst.msk [vmem:[#allocation2 + $0x10] sm:$0xff] %vm2857_vm8, %v2850_v36 }
0x144d   : > { %v3279_v55 = vpop.permute.xlu0 %3278  ;;  %v3721_v19 = vld [vmem:[#allocation2 + $0x8] sm:$0xff] }
0x144e   : > { %3289 = vst.msk [vmem:[#allocation2 + $0x10] sm:$0xff] %vm3286_vm9, %v3279_v55  ;;  %v2423_v33 = vpop.permute.xlu1 %2422  ;;  %v3720_v37 = vld [vmem:[#allocation2] sm:$0xff] }
0x144f   : > { %2432 = vst.msk [vmem:[#allocation2 + $0x18] sm:$0xff] %vm2428_vm7, %v2423_v33  ;;  %4398 = vmatprep.mubr.msk.f32.mxu0 %vm209_vm0, %v3720_v37 }
0x1450   : > { %4399 = vmatmul.mubr.msk.f32.vlgmr.msra.gmra.mrb[30].mxu0 %vm209_vm0, %v3721_v19 }
0x1451   : > { %v3708_v38 = vpop.permute.xlu0 %3707 }
0x1452   : > { %3718 = vst.msk [vmem:[#allocation2 + $0x10] sm:$0xff] %vm3715_vm10, %v3708_v38  ;;  %v2852_v39 = vpop.permute.xlu1 %2851 }
0x1453   : > { %2861 = vst.msk [vmem:[#allocation2 + $0x18] sm:$0xff] %vm2857_vm8, %v2852_v39 }
0x1456   : > { %v3281_v40 = vpop.permute.xlu1 %3280 }
0x1457   : > { %3290 = vst.msk [vmem:[#allocation2 + $0x18] sm:$0xff] %vm3286_vm9, %v3281_v40 }
0x1459   : > { %v3722_v41 = vld [vmem:[#allocation2 + $0x10] sm:$0xff] }
0x145a   : > { %v3710_v42 = vpop.permute.xlu1 %3709  ;;  %4401 = vmatprep.mubr.msk.f32.mxu0 %vm209_vm0, %v3722_v41 }
0x145b   : > { %3719 = vst.msk [vmem:[#allocation2 + $0x18] sm:$0xff] %vm3715_vm10, %v3710_v42 }
0x1462   : > { %v3723_v47 = vld [vmem:[#allocation2 + $0x18] sm:$0xff] }
0x1463   : > { %4402 = vmatmul.mubr.msk.f32.gmra.mrb[32].mxu0 %vm209_vm0, %v3723_v47 }
0x1523   : > { %v4400_v49 = vpop.f32.mrb[30].mxu0 }
0x1524   : > { %v3813_v12 = vpop.f32.mrb[31].mxu0  ;;  %v3819_v43 = vadd.f32 %v4400_v49, %v4001_v48 }
0x1525   : > { %v3814_v15 = vadd.f32 %v4001_v48, %v3813_v12 }
0x1526   : > { %3833 = vst.msk [vmem:[%s199_s25 + $0x8] sm:$0xff] %vm209_vm0, %v3819_v43 }
0x1527   : > { %3832 = vst.msk [vmem:[%s199_s25] sm:$0xff] %vm209_vm0, %v3814_v15 }
0x1536   : > { %v4403_v44 = vpop.f32.mrb[32].mxu0 }
0x1537   : > { %v3823_v51 = vpop.f32.mrb[33].mxu0  ;;  %v3829_v58 = vadd.f32 %v4403_v44, %v4001_v48 }
0x1538   : > { %v3824_v52 = vadd.f32 %v4001_v48, %v3823_v51 }
0x1539   : > { %3835 = vst.msk [vmem:[%s199_s25 + $0x18] sm:$0xff] %vm209_vm0, %v3829_v58 }
0x153a   : > { %3834 = vst.msk [vmem:[%s199_s25 + $0x10] sm:$0xff] %vm209_vm0, %v3824_v52 }
0x153b PF: > { %s14_s15 = sadd.s32 1, %s4912_s15  }
0x153c   : > { %p11_p4 = scmp.ge.s32.totalorder %s14_s15, 4  }
0x153e   :  { %13 = sbr.rel (!%p11_p4) target bundleno = 1 (0x1), region = 66 }

</bundles_post_ra>
